<compile_context>
chip_gen: v7x
topology: tpu7x:2x2x1
jax: 0.10.0
libtpu: 0.0.40
codegen_flags: <defaults>
</compile_context>

<pallas_src>
import functools
import math

import numpy as np

import jax
import jax.numpy as jnp
from jax import lax  # noqa: F401  (kept for clarity; not strictly required)
from jax.experimental import pallas as pl
from jax.experimental.pallas import tpu as pltpu

ENC_L = 6  # default enc_l of the module


def _freq_enc_kernel(x_ref, scale_ref, phase_ref, isx_ref, o_ref):
    """x_ref: (tm, D); scale/phase/isx: (1, out_D); o_ref: (tm, out_D)."""
    D = x_ref.shape[-1]
    W = o_ref.shape[-1]
    reps = W // D  # 2*enc_l + 1

    x = x_ref[...].astype(jnp.float32)  # trig always in f32 (bf16 inputs upcast)

    # Single lane replication: (tm, D) -> (tm, reps*D); lane j holds x[:, j % D].
    x_rep = jnp.concatenate([x] * reps, axis=-1)

    # One lane-dense multiply-add against the hoisted constant rows; every
    # frequency and both cos/sin are folded into a single lane-dense cos via
    # sin(a) = cos(a - pi/2).
    arg = x_rep * scale_ref[...] + phase_ref[...]
    val = jnp.where(isx_ref[...] != 0, x_rep, jnp.cos(arg))

    # ONE full-tile store (the `x` segment was merged in by the select above).
    o_ref[...] = val.astype(o_ref.dtype)


def _const_rows(D, enc_l):
    """Trace-time (1, out_D) constant rows: per-lane scale, phase, is-x flag."""
    reps = 2 * enc_l + 1
    scale = np.ones((reps,), np.float64)
    phase = np.zeros((reps,), np.float64)
    isx = np.zeros((reps,), np.int32)
    isx[0] = 1  # first D lanes carry x itself
    for i in range(enc_l):
        s = math.pi * (2.0 ** i)
        scale[1 + 2 * i] = s                 # cos(s_i * x)
        scale[2 + 2 * i] = s                 # sin(s_i * x) = cos(s_i * x - pi/2)
        phase[2 + 2 * i] = -math.pi / 2.0
    scale_row = jnp.asarray(np.repeat(scale, D)[None, :].astype(np.float32))
    phase_row = jnp.asarray(np.repeat(phase, D)[None, :].astype(np.float32))
    isx_row = jnp.asarray(np.repeat(isx, D)[None, :].astype(np.int32))
    return scale_row, phase_row, isx_row


def _choose_tm(N, D, out_D, itemsize):
    """Row tile sized by block BYTES: double-buffered in/out blocks plus ~4
    live f32 (tm, out_D) elementwise temporaries under a ~20 MiB budget
    (safe against v7x's 32 MiB scoped / 64 MiB physical VMEM), capped at
    8192 rows.  Keep >= 2 'parallel' grid steps so a v7x megacore can split
    the axis; on single-TC v5e/v6e that costs at most one ~0.35 us step."""
    bytes_per_row = 2 * itemsize * (D + out_D) + 4 * 4 * out_D
    budget = 20 * 1024 * 1024
    tm = min(8192, budget // max(bytes_per_row, 1))
    tm = min(tm, -(-N // 2))          # at most ~N/2 rows per step (>= 2 steps)
    tm = max(8, (tm // 8) * 8)        # sublane multiple
    return int(tm)


def freq_encoding(x, enc_l=ENC_L):
    """Pallas implementation of FreqEncoding.forward.

    x: float array of shape (..., D). Returns (..., D*(2*enc_l+1)).
    """
    orig_shape = x.shape
    D = orig_shape[-1]
    out_D = D * (2 * enc_l + 1)
    lead = orig_shape[:-1]
    N = 1
    for s in lead:
        N *= s

    x2 = x.reshape(N, D)
    itemsize = jnp.dtype(x2.dtype).itemsize
    tm = _choose_tm(N, D, out_D, itemsize)
    grid = (pl.cdiv(N, tm),)  # ragged last block handled by Pallas (no pad copy)

    scale_row, phase_row, isx_row = _const_rows(D, enc_l)

    cost = pl.CostEstimate(
        flops=3 * N * out_D,                # mul + add + select per output lane
        transcendentals=N * out_D,          # one cos per output lane
        bytes_accessed=(N * D + N * out_D) * itemsize,
    )

    out = pl.pallas_call(
        _freq_enc_kernel,
        out_shape=jax.ShapeDtypeStruct((N, out_D), x2.dtype),
        grid_spec=pltpu.PrefetchScalarGridSpec(
            num_scalar_prefetch=0,
            grid=grid,
            in_specs=[
                pl.BlockSpec((tm, D), lambda i: (i, 0)),
                pl.BlockSpec((1, out_D), lambda i: (0, 0)),   # scale row
                pl.BlockSpec((1, out_D), lambda i: (0, 0)),   # phase row
                pl.BlockSpec((1, out_D), lambda i: (0, 0)),   # is-x flag row
            ],
            out_specs=pl.BlockSpec((tm, out_D), lambda i: (i, 0)),
        ),
        compiler_params=pltpu.CompilerParams(
            dimension_semantics=("parallel",),
            vmem_limit_bytes=32 * 1024 * 1024,
        ),
        cost_estimate=cost,
    )(x2, scale_row, phase_row, isx_row)

    return out.reshape(*lead, out_D)


def freq_encoding_ref(x, enc_l=ENC_L):
    """Pure-JAX reference (mirrors the PyTorch posEnc)."""
    gama = [x]
    for i in range(enc_l):
        gama.append(jnp.cos((2.0 ** i) * jnp.pi * x))
        gama.append(jnp.sin((2.0 ** i) * jnp.pi * x))
    return jnp.concatenate(gama, axis=-1)


if __name__ == "__main__":
    key = jax.random.PRNGKey(0)

    # Small input consistent with the module's forward: any (..., D) tensor.
    x = jax.random.uniform(key, (2, 4, 16, 16), dtype=jnp.float32,
                           minval=-1.0, maxval=1.0)
    out = jax.block_until_ready(freq_encoding(x))
    ref = freq_encoding_ref(x)
    assert out.shape == (2, 4, 16, 16 * (2 * ENC_L + 1)), out.shape
    # Tolerance 1e-4 absolute: folding sin(a) = cos(a - pi/2) adds ~1 ulp of
    # rounding in the (|a| <= 32*pi) argument; well below 1e-4 on the result.
    err = float(jnp.max(jnp.abs(out - ref)))
    assert err < 1e-4, err

    # Second check: row count not a multiple of the tile (exercises the
    # pad-free ragged-last-block path).
    xb = jax.random.uniform(jax.random.PRNGKey(0), (3, 50, 16),
                            dtype=jnp.float32, minval=-1.0, maxval=1.0)
    outb = jax.block_until_ready(freq_encoding(xb))
    refb = freq_encoding_ref(xb)
    assert outb.shape == (3, 50, 16 * (2 * ENC_L + 1)), outb.shape
    errb = float(jnp.max(jnp.abs(outb - refb)))
    assert errb < 1e-4, errb

    print("KERNEL_OK")
</pallas_src>

<mosaic_0001>
module attributes {stable_mosaic.version = 11 : i64} {
  func.func @_freq_enc_kernel(%arg0: i32, %arg1: memref<64x16xf32, #tpu.memory_space<vmem>>, %arg2: memref<1x208xf32, #tpu.memory_space<vmem>>, %arg3: memref<1x208xf32, #tpu.memory_space<vmem>>, %arg4: memref<1x208xi32, #tpu.memory_space<vmem>>, %arg5: memref<64x208xf32, #tpu.memory_space<vmem>>) attributes {dimension_semantics = [#tpu.dimension_semantics<parallel>], iteration_bounds = array<i64: 2>, scalar_prefetch = 0 : i64, scratch_operands = 0 : i64, tpu.core_type = #tpu.core_type<tc>, window_params = [{transform_indices = @transform_0, window_bounds = array<i64: 64, 16>}, {pipeline_mode = #tpu.pipeline_mode<synchronous>, transform_indices = @transform_1, window_bounds = array<i64: 1, 208>}, {pipeline_mode = #tpu.pipeline_mode<synchronous>, transform_indices = @transform_2, window_bounds = array<i64: 1, 208>}, {pipeline_mode = #tpu.pipeline_mode<synchronous>, transform_indices = @transform_3, window_bounds = array<i64: 1, 208>}, {transform_indices = @transform_4, window_bounds = array<i64: 64, 208>}]} {
    %c0 = arith.constant 0 : index
    %c0_0 = arith.constant 0 : index
    %0 = vector.load %arg1[%c0, %c0_0] : memref<64x16xf32, #tpu.memory_space<vmem>>, vector<64x16xf32>
    %1 = tpu.concatenate %0, %0, %0, %0, %0, %0, %0, %0, %0, %0, %0, %0, %0 in 1 : vector<64x16xf32>, vector<64x16xf32>, vector<64x16xf32>, vector<64x16xf32>, vector<64x16xf32>, vector<64x16xf32>, vector<64x16xf32>, vector<64x16xf32>, vector<64x16xf32>, vector<64x16xf32>, vector<64x16xf32>, vector<64x16xf32>, vector<64x16xf32> -> vector<64x208xf32>
    %c0_1 = arith.constant 0 : index
    %c0_2 = arith.constant 0 : index
    %2 = vector.load %arg2[%c0_1, %c0_2] : memref<1x208xf32, #tpu.memory_space<vmem>>, vector<1x208xf32>
    %3 = vector.broadcast %2 : vector<1x208xf32> to vector<64x208xf32>
    %4 = arith.mulf %1, %3 : vector<64x208xf32>
    %c0_3 = arith.constant 0 : index
    %c0_4 = arith.constant 0 : index
    %5 = vector.load %arg3[%c0_3, %c0_4] : memref<1x208xf32, #tpu.memory_space<vmem>>, vector<1x208xf32>
    %6 = vector.broadcast %5 : vector<1x208xf32> to vector<64x208xf32>
    %7 = arith.addf %4, %6 : vector<64x208xf32>
    %c0_5 = arith.constant 0 : index
    %c0_6 = arith.constant 0 : index
    %8 = vector.load %arg4[%c0_5, %c0_6] : memref<1x208xi32, #tpu.memory_space<vmem>>, vector<1x208xi32>
    %c0_i32 = arith.constant 0 : i32
    %9 = vector.broadcast %c0_i32 : i32 to vector<1x208xi32>
    %10 = arith.cmpi ne, %8, %9 : vector<1x208xi32>
    %11 = math.cos %7 : vector<64x208xf32>
    %12 = vector.shape_cast %10 : vector<1x208xi1> to vector<1x208xi1>
    %13 = vector.broadcast %12 : vector<1x208xi1> to vector<64x208xi1>
    %14 = arith.select %13, %1, %11 : vector<64x208xi1>, vector<64x208xf32>
    %c0_7 = arith.constant 0 : index
    %c0_8 = arith.constant 0 : index
    %15 = vector.load %arg5[%c0_7, %c0_8] : memref<64x208xf32, #tpu.memory_space<vmem>>, vector<64x208xf32>
    tpu.vector_store %arg5[%c0_7, %c0_8], %14 {strides = array<i32>} : memref<64x208xf32, #tpu.memory_space<vmem>>, vector<64x208xf32>,
    return
  }
  func.func @transform_0(%arg0: i32) -> (i32, i32) {
    %c0_i32 = arith.constant 0 : i32
    %c0_i32_0 = arith.constant 0 : i32
    return %arg0, %c0_i32 : i32, i32
  }
  func.func @transform_1(%arg0: i32) -> (i32, i32) {
    %c0_i32 = arith.constant 0 : i32
    %c0_i32_0 = arith.constant 0 : i32
    %c0_i32_1 = arith.constant 0 : i32
    return %c0_i32, %c0_i32_0 : i32, i32
  }
  func.func @transform_2(%arg0: i32) -> (i32, i32) {
    %c0_i32 = arith.constant 0 : i32
    %c0_i32_0 = arith.constant 0 : i32
    %c0_i32_1 = arith.constant 0 : i32
    return %c0_i32, %c0_i32_0 : i32, i32
  }
  func.func @transform_3(%arg0: i32) -> (i32, i32) {
    %c0_i32 = arith.constant 0 : i32
    %c0_i32_0 = arith.constant 0 : i32
    %c0_i32_1 = arith.constant 0 : i32
    return %c0_i32, %c0_i32_0 : i32, i32
  }
  func.func @transform_4(%arg0: i32) -> (i32, i32) {
    %c0_i32 = arith.constant 0 : i32
    %c0_i32_0 = arith.constant 0 : i32
    return %arg0, %c0_i32 : i32, i32
  }
}

</mosaic_0001>

<bundles_post_ra>
// kernel: tpu_custom_call.1
= control target key start
LH: loop header
LB: loop body
LE: loop exit
PB: predicated region body
PF: predicated region fallthrough
CT: control target
= control target key end

     0   :  { %s2533_s15 = smov 0   ;;  %s4326_s0 = inlined_call_operand.vmem [shape: f32[128,16], index: 0, kind: input, shape index: {}]   ;;  %s4327_s1 = inlined_call_operand.vmem [shape: f32[1,208], index: 1, kind: input, shape index: {}]   ;;  %s4328_s2 = inlined_call_operand.vmem [shape: f32[1,208], index: 2, kind: input, shape index: {}]   ;;  %s4329_s3 = inlined_call_operand.vmem [shape: s32[1,208], index: 3, kind: input, shape index: {}]   ;;  %s4330_s4 = inlined_call_operand.vmem [shape: f32[128,208], index: 4, kind: output, shape index: {}]  }
   0x1 LB: > { %s2257_s16 = sadd.s32 4294967295, %s2492_s15   ;;  %p2261_p0 = scmp.ge.s32.totalorder %s2492_s15, 1  ;;  %s2492_s15 = sphi %s2533_s15, %s14_s15  }
   0x2   : > { %p163_p1 = scmp.lt.s32.totalorder %s2492_s15, 3 }
   0x4   : > { %p164_p2 = pnand %p2261_p0, %p163_p1 }
   0x5   : > { %s2262_s17 = sshll.u32 (!%p164_p2), %s2257_s16, 3  ;;  %s2494_s22 = smov (!%p164_p2), 16   ;;  %vm387_vm0 = vcmask (!%p164_p2), 130048   ;;  %vm396_vm1 = vcmask (!%p164_p2), 261120   ;;  %v452_v36 = vlaneseq (!%p164_p2)  ;;  %vm405_vm2 = vcmask (!%p164_p2), 392192  }
   0x6   : > { %167 = sbr.rel (%p164_p2) target bundleno = 634 (0x27a), region = 36  ;;  %p191_p3 = scmp.lt.s32.totalorder (!%p164_p2), %s2262_s17, 15  ;;  %v450_v45 = vld [vmem:[%s4327_s1] sm:$0x3] (!%p164_p2)  ;;  %vm414_vm3 = vcmask (!%p164_p2), 523264  }
   0x7   : > { %s2495_s23 = smov (!%p164_p2), 32   ;;  %s2496_s24 = smov (!%p164_p2), 48   ;;  %v2634_v39 = vshrl.u32 (!%p164_p2), %v452_v36, 7  ;;  %v478_v50 = vld [vmem:[%s4328_s2] sm:$0x3] (!%p164_p2) }
   0x8   : > { %s2497_s25 = smov (!%p164_p2), 64   ;;  %s2498_s26 = smov (!%p164_p2), 80  }
   0x9   : > { %s2499_s27 = smov (!%p164_p2), 96   ;;  %s2500_s28 = smov (!%p164_p2), 112   ;;  %v2643_v44 = vsub.s32 (!%p164_p2), 1, %v2634_v39 }
   0xb   : > { %v2662_v53 = vrot.slane (!%p164_p2), %v450_v45, %v2643_v44  ;;  %v2669_v58 = vrot.slane (!%p164_p2), %v478_v50, %v2643_v44  ;;  %v4333_v50 = vmov (!%p164_p2), 2475754826  }
   0xd   : > { %s4381_s17 = smov (!%p191_p3, %s2262_s17), 15 }
   0xe   : > { %s2263_s18 = sshll.u32 %s4381_s17, 3  ;;  %s2333_s9 = sshll.u32 %s4381_s17, 4 }
   0xf   : > { %s194_s21 = scalar_lea.vmem %s4326_s0, %s2263_s18  ;;  %s3007_s12 = scalar_lea.vmem %s4330_s4, %s2333_s9 }
  0x10   : > { %v2547_v0 = vld [vmem:[%s194_s21 + $0x10] sm:$0xff]  ;;  %v2549_v1 = vld [vmem:[%s194_s21] sm:$0xff]  ;;  %v2553_v2 = vld [vmem:[%s194_s21 + $0x18] sm:$0xff] }
  0x11   : > { %223 = vrot.lane.b32.xlu1 %v2547_v0, %s2494_s22  ;;  %219 = vrot.lane.b32.xlu0 %v2549_v1, %s2494_s22  ;;  %v2555_v3 = vld [vmem:[%s194_s21 + $0x8] sm:$0xff]  ;;  %v2561_v5 = vld [vmem:[%s194_s21 + $0x20] sm:$0xff] }
  0x12   : > { %v2559_v4 = vld [vmem:[%s194_s21 + $0x28] sm:$0xff]  ;;  %v2565_v6 = vld [vmem:[%s194_s21 + $0x38] sm:$0xff]  ;;  %v2567_v7 = vld [vmem:[%s194_s21 + $0x30] sm:$0xff] }
  0x15   : > { %225 = vrot.lane.b32.xlu1 %v2553_v2, %s2494_s22  ;;  %221 = vrot.lane.b32.xlu0 %v2555_v3, %s2494_s22 }
  0x19   : > { %229 = vrot.lane.b32.xlu1 %v2559_v4, %s2494_s22  ;;  %227 = vrot.lane.b32.xlu0 %v2561_v5, %s2494_s22 }
  0x1d   : > { %233 = vrot.lane.b32.xlu1 %v2565_v6, %s2494_s22  ;;  %231 = vrot.lane.b32.xlu0 %v2567_v7, %s2494_s22 }
  0x21   : > { %245 = vrot.lane.b32.xlu1 %v2555_v3, %s2495_s23  ;;  %243 = vrot.lane.b32.xlu0 %v2549_v1, %s2495_s23 }
  0x25   : > { %249 = vrot.lane.b32.xlu1 %v2553_v2, %s2495_s23  ;;  %247 = vrot.lane.b32.xlu0 %v2547_v0, %s2495_s23 }
  0x29   : > { %253 = vrot.lane.b32.xlu1 %v2559_v4, %s2495_s23  ;;  %251 = vrot.lane.b32.xlu0 %v2561_v5, %s2495_s23 }
  0x2d   : > { %257 = vrot.lane.b32.xlu1 %v2565_v6, %s2495_s23  ;;  %255 = vrot.lane.b32.xlu0 %v2567_v7, %s2495_s23 }
  0x31   : > { %269 = vrot.lane.b32.xlu1 %v2555_v3, %s2496_s24  ;;  %267 = vrot.lane.b32.xlu0 %v2549_v1, %s2496_s24 }
  0x35   : > { %273 = vrot.lane.b32.xlu1 %v2553_v2, %s2496_s24  ;;  %271 = vrot.lane.b32.xlu0 %v2547_v0, %s2496_s24 }
  0x39   : > { %277 = vrot.lane.b32.xlu1 %v2559_v4, %s2496_s24  ;;  %275 = vrot.lane.b32.xlu0 %v2561_v5, %s2496_s24 }
  0x3d   : > { %281 = vrot.lane.b32.xlu1 %v2565_v6, %s2496_s24  ;;  %279 = vrot.lane.b32.xlu0 %v2567_v7, %s2496_s24 }
  0x41   : > { %293 = vrot.lane.b32.xlu1 %v2555_v3, %s2497_s25  ;;  %291 = vrot.lane.b32.xlu0 %v2549_v1, %s2497_s25 }
  0x45   : > { %297 = vrot.lane.b32.xlu1 %v2553_v2, %s2497_s25  ;;  %295 = vrot.lane.b32.xlu0 %v2547_v0, %s2497_s25 }
  0x49   : > { %301 = vrot.lane.b32.xlu1 %v2559_v4, %s2497_s25  ;;  %299 = vrot.lane.b32.xlu0 %v2561_v5, %s2497_s25 }
  0x4d   : > { %305 = vrot.lane.b32.xlu1 %v2565_v6, %s2497_s25  ;;  %303 = vrot.lane.b32.xlu0 %v2567_v7, %s2497_s25 }
  0x51   : > { %317 = vrot.lane.b32.xlu1 %v2555_v3, %s2498_s26  ;;  %315 = vrot.lane.b32.xlu0 %v2549_v1, %s2498_s26 }
  0x55   : > { %321 = vrot.lane.b32.xlu1 %v2553_v2, %s2498_s26  ;;  %319 = vrot.lane.b32.xlu0 %v2547_v0, %s2498_s26 }
  0x59   : > { %325 = vrot.lane.b32.xlu1 %v2559_v4, %s2498_s26  ;;  %323 = vrot.lane.b32.xlu0 %v2561_v5, %s2498_s26 }
  0x5d   : > { %329 = vrot.lane.b32.xlu1 %v2565_v6, %s2498_s26  ;;  %327 = vrot.lane.b32.xlu0 %v2567_v7, %s2498_s26 }
  0x61   : > { %341 = vrot.lane.b32.xlu1 %v2555_v3, %s2499_s27  ;;  %339 = vrot.lane.b32.xlu0 %v2549_v1, %s2499_s27 }
  0x65   : > { %345 = vrot.lane.b32.xlu1 %v2553_v2, %s2499_s27  ;;  %343 = vrot.lane.b32.xlu0 %v2547_v0, %s2499_s27 }
  0x69   : > { %349 = vrot.lane.b32.xlu1 %v2559_v4, %s2499_s27  ;;  %347 = vrot.lane.b32.xlu0 %v2561_v5, %s2499_s27 }
  0x6d   : > { %353 = vrot.lane.b32.xlu1 %v2565_v6, %s2499_s27  ;;  %351 = vrot.lane.b32.xlu0 %v2567_v7, %s2499_s27 }
  0x71   : > { %365 = vrot.lane.b32.xlu1 %v2555_v3, %s2500_s28  ;;  %363 = vrot.lane.b32.xlu0 %v2549_v1, %s2500_s28 }
  0x75   : > { %369 = vrot.lane.b32.xlu1 %v2553_v2, %s2500_s28  ;;  %367 = vrot.lane.b32.xlu0 %v2547_v0, %s2500_s28 }
  0x79   : > { %373 = vrot.lane.b32.xlu1 %v2559_v4, %s2500_s28  ;;  %371 = vrot.lane.b32.xlu0 %v2561_v5, %s2500_s28 }
  0x7d   : > { %377 = vrot.lane.b32.xlu1 %v2565_v6, %s2500_s28  ;;  %375 = vrot.lane.b32.xlu0 %v2567_v7, %s2500_s28 }
  0x83   : > { %v224_v8 = vpop.permute.xlu1 %223  ;;  %v220_v9 = vpop.permute.xlu0 %219 }
  0x84   : > { %v390_v22 = vsel %vm387_vm0, %v2547_v0, %v224_v8  ;;  %v388_v51 = vsel %vm387_vm0, %v2549_v1, %v220_v9 }
  0x87   : > { %v226_v10 = vpop.permute.xlu1 %225  ;;  %v222_v11 = vpop.permute.xlu0 %221 }
  0x88   : > { %v389_v52 = vsel %vm387_vm0, %v2555_v3, %v222_v11  ;;  %v391_v63 = vsel %vm387_vm0, %v2553_v2, %v226_v10 }
  0x8b   : > { %v230_v12 = vpop.permute.xlu1 %229  ;;  %v228_v13 = vpop.permute.xlu0 %227 }
  0x8c   : > { %v393_v14 = vsel %vm387_vm0, %v2559_v4, %v230_v12  ;;  %v392_v15 = vsel %vm387_vm0, %v2561_v5, %v228_v13 }
  0x8f   : > { %v234_v16 = vpop.permute.xlu1 %233  ;;  %v232_v17 = vpop.permute.xlu0 %231 }
  0x90   : > { %v395_v18 = vsel %vm387_vm0, %v2565_v6, %v234_v16  ;;  %v394_v19 = vsel %vm387_vm0, %v2567_v7, %v232_v17 }
  0x93   : > { %v246_v20 = vpop.permute.xlu1 %245  ;;  %v244_v21 = vpop.permute.xlu0 %243 }
  0x94   : > { %v398_v54 = vsel %vm396_vm1, %v389_v52, %v246_v20  ;;  %v397_v55 = vsel %vm396_vm1, %v388_v51, %v244_v21  ;;  %v4335_v52 = vmov 2131351028  }
  0x97   : > { %v250_v23 = vpop.permute.xlu1 %249  ;;  %v248_v24 = vpop.permute.xlu0 %247 }
  0x98   : > { %v399_v25 = vsel %vm396_vm1, %v390_v22, %v248_v24  ;;  %v400_v3 = vsel %vm396_vm1, %v391_v63, %v250_v23 }
  0x9b   : > { %v254_v26 = vpop.permute.xlu1 %253  ;;  %v252_v27 = vpop.permute.xlu0 %251 }
  0x9c   : > { %v402_v28 = vsel %vm396_vm1, %v393_v14, %v254_v26  ;;  %v401_v29 = vsel %vm396_vm1, %v392_v15, %v252_v27 }
  0x9f   : > { %v258_v30 = vpop.permute.xlu1 %257  ;;  %v256_v31 = vpop.permute.xlu0 %255 }
  0xa0   : > { %v404_v32 = vsel %vm396_vm1, %v395_v18, %v258_v30  ;;  %v403_v33 = vsel %vm396_vm1, %v394_v19, %v256_v31 }
  0xa3   : > { %v270_v34 = vpop.permute.xlu1 %269  ;;  %v268_v35 = vpop.permute.xlu0 %267 }
  0xa4   : > { %v407_v56 = vsel %vm405_vm2, %v398_v54, %v270_v34  ;;  %v406_v57 = vsel %vm405_vm2, %v397_v55, %v268_v35  ;;  %v2504_v55 = vmov 2102212464  }
  0xa7   : > { %v274_v37 = vpop.permute.xlu1 %273  ;;  %v272_v38 = vpop.permute.xlu0 %271 }
  0xa8   : > { %v409_v4 = vsel %vm405_vm2, %v400_v3, %v274_v37  ;;  %v408_v20 = vsel %vm405_vm2, %v399_v25, %v272_v38 }
  0xab   : > { %v278_v40 = vpop.permute.xlu1 %277  ;;  %v276_v41 = vpop.permute.xlu0 %275 }
  0xac   : > { %v2637_v42 = vsel %vm405_vm2, %v402_v28, %v278_v40  ;;  %v2640_v43 = vsel %vm405_vm2, %v401_v29, %v276_v41  ;;  %v2501_v41 = vmov 683565275  }
  0xaf   : > { %v282_v46 = vpop.permute.xlu1 %281  ;;  %v280_v47 = vpop.permute.xlu0 %279 }
  0xb0   : > { %v2649_v48 = vsel %vm405_vm2, %v404_v32, %v282_v46  ;;  %v2652_v49 = vsel %vm405_vm2, %v403_v33, %v280_v47 }
  0xb3   : > { %v294_v59 = vpop.permute.xlu1 %293  ;;  %v292_v60 = vpop.permute.xlu0 %291 }
  0xb4   : > { %v2672_v61 = vsel %vm414_vm3, %v407_v56, %v294_v59  ;;  %v2675_v62 = vsel %vm414_vm3, %v406_v57, %v292_v60  ;;  %v2505_v57 = vmov 920167782  }
  0xb5   : > { %v465_v0 = vmul.f32 %v2662_v53, %v2672_v61  ;;  %v463_v1 = vmul.f32 %v2662_v53, %v2675_v62 }
  0xb7   : > { %v2686_v5 = vadd.f32 %v2669_v58, %v465_v0  ;;  %v2689_v6 = vadd.f32 %v2669_v58, %v463_v1  ;;  %v298_v7 = vpop.permute.xlu1 %297  ;;  %v296_v17 = vpop.permute.xlu0 %295 }
  0xb8   : > { %v2692_v8 = vsel %vm414_vm3, %v409_v4, %v298_v7  ;;  %v2709_v24 = vsel %vm414_vm3, %v408_v20, %v296_v17  ;;  %v2506_v4 = vmov 1326507024  }
  0xb9   : > { %v817_v2 = vand.u32 2147483647, %v2686_v5  ;;  %v820_v9 = vand.u32 2139095040, %v2686_v5  ;;  %v611_v10 = vand.u32 2147483647, %v2689_v6  ;;  %v614_v11 = vand.u32 2139095040, %v2689_v6 }
  0xba   : > { %v469_v14 = vmul.f32 %v2662_v53, %v2692_v8  ;;  %v2715_v25 = vmul.f32 %v2662_v53, %v2709_v24  ;;  %vm819_vm2 = vcmp.lt.s32.totalorder %v2686_v5, 0 }
  0xbb   : > { %v821_v12 = vshrl.u32 %v820_v9, 23  ;;  %v824_v13 = vand.u32 8388607, %v817_v2  ;;  %v615_v15 = vshrl.u32 %v614_v11, 23  ;;  %v618_v16 = vand.u32 8388607, %v611_v10 }
  0xbc   : > { %v2705_v19 = vadd.f32 %v2669_v58, %v469_v14 }
  0xbd   : > { %v2279_v18 = vadd.s32 4294967169, %v821_v12  ;;  %v2271_v21 = vadd.s32 4294967169, %v615_v15  ;;  %v825_v22 = vor.u32 8388608, %v824_v13  ;;  %v619_v26 = vor.u32 8388608, %v618_v16 }
  0xbe   : > { %v1229_v28 = vand.u32 2147483647, %v2705_v19  ;;  %v1232_v29 = vand.u32 2139095040, %v2705_v19 }
  0xbf   : > { %v827_v23 = vadd.s32 1, %v2279_v18  ;;  %v621_v27 = vadd.s32 1, %v2271_v21  ;;  %v2717_v35 = vshll.u32 %v825_v22, 8  ;;  %v2721_v37 = vshll.u32 %v619_v26, 8 }
  0xc0   : > { %v1233_v31 = vshrl.u32 %v1232_v29, 23  ;;  %v2725_v38 = vand.u32 8388607, %v1229_v28 }
  0xc1   : > { %vm828_vm4 = vcmp.gt.s32.totalorder %v827_v23, 0  ;;  %vm622_vm5 = vcmp.gt.s32.totalorder %v621_v27, 0 }
  0xc2   : > { %v829_v30 = vsel %vm828_vm4, %v827_v23, 0  ;;  %v623_v34 = vsel %vm622_vm5, %v621_v27, 0  ;;  %v2728_v47 = vadd.s32 4294967169, %v1233_v31  ;;  %vm2854_vm5 = vcmp.le.f32.partialorder %v817_v2, 0.7853982 }
  0xc3   : > { %v830_v32 = vshrl.u32 %v829_v30, 5  ;;  %v831_v33 = vand.u32 31, %v829_v30  ;;  %v2719_v36 = vshrl.u32 %v623_v34, 5  ;;  %v625_v46 = vand.u32 31, %v623_v34 }
  0xc5   : > { %v832_v40 = vsub.s32 32, %v831_v33  ;;  %v834_v45 = vshll.u32 %v2501_v41, %v831_v33  ;;  %v837_v51 = vshll.u32 %v4333_v50, %v831_v33  ;;  %v840_v54 = vshll.u32 %v4335_v52, %v831_v33 }
  0xc6   : > { %v843_v56 = vshll.u32 %v2504_v55, %v831_v33  ;;  %v846_v59 = vshll.u32 %v2505_v57, %v831_v33  ;;  %vm849_vm6 = vcmp.lt.s32.totalorder %v830_v32, 1  ;;  %vm850_vm7 = vcmp.lt.s32.totalorder %v830_v32, 2 }
  0xc7   : > { %v835_v60 = vshrl.u32 %v4333_v50, %v832_v40  ;;  %v838_v63 = vshrl.u32 %v4335_v52, %v832_v40  ;;  %v841_v0 = vshrl.u32 %v2504_v55, %v832_v40  ;;  %v833_v1 = vshrl.u32 %v2501_v41, %v832_v40 }
  0xc8   : > { %v844_v3 = vshrl.u32 %v2505_v57, %v832_v40  ;;  %v847_v7 = vshrl.u32 %v2506_v4, %v832_v40  ;;  %v626_v13 = vsub.s32 32, %v625_v46  ;;  %vm851_vm8 = vcmp.lt.s32.totalorder %v830_v32, 3 }
  0xc9   : > { %v836_v9 = vor.u32 %v835_v60, %v834_v45  ;;  %v839_v11 = vor.u32 %v838_v63, %v837_v51  ;;  %v842_v12 = vor.u32 %v841_v0, %v840_v54  ;;  %vm852_vm9 = vcmp.lt.s32.totalorder %v830_v32, 4 }
  0xca   : > { %v845_v14 = vor.u32 %v844_v3, %v843_v56  ;;  %v848_v15 = vor.u32 %v847_v7, %v846_v59  ;;  %v628_v26 = vshll.u32 %v2501_v41, %v625_v46  ;;  %v629_v30 = vshrl.u32 %v4333_v50, %v626_v13 }
  0xcb   : > { %v853_v16 = vsel %vm849_vm6, %v833_v1, %v836_v9  ;;  %v854_v17 = vsel %vm852_vm9, %v842_v12, 2102212464  ;;  %v857_v18 = vsel %vm849_vm6, %v836_v9, %v839_v11  ;;  %v861_v20 = vsel %vm849_vm6, %v839_v11, %v842_v12 }
  0xcc   : > { %v855_v21 = vsel %vm851_vm8, %v839_v11, %v854_v17  ;;  %v858_v22 = vsel %vm852_vm9, %v845_v14, 920167782  ;;  %v862_v23 = vsel %vm852_vm9, %v848_v15, 1326507024  ;;  %v631_v31 = vshll.u32 %v4333_v50, %v625_v46 }
  0xcd   : > { %v859_v27 = vsel %vm851_vm8, %v842_v12, %v858_v22  ;;  %v863_v29 = vsel %vm851_vm8, %v845_v14, %v862_v23  ;;  %v856_v33 = vsel %vm850_vm7, %v853_v16, %v855_v21  ;;  %v632_v45 = vshrl.u32 %v4335_v52, %v626_v13 }
  0xce   : > { %v860_v34 = vsel %vm850_vm7, %v857_v18, %v859_v27  ;;  %v864_v40 = vsel %vm850_vm7, %v861_v20, %v863_v29  ;;  %v630_v60 = vor.u32 %v629_v30, %v628_v26  ;;  %v634_v0 = vshll.u32 %v4335_v52, %v625_v46 }
  0xcf   : > { %v2751_v51 = vmul.u32.u64.low %v2717_v35, %v864_v40  ;;  %v2752_v54 = vmul.u32.u64.high %v2717_v35, %v864_v40, %v2751_v51  ;;  %v2755_v56 = vmul.u32.u64.low %v2717_v35, %v860_v34  ;;  %v2756_v59 = vmul.u32.u64.high %v2717_v35, %v860_v34, %v2755_v56 }
  0xd0   : > { %v633_v63 = vor.u32 %v632_v45, %v631_v31  ;;  %v635_v1 = vshrl.u32 %v2504_v55, %v626_v13  ;;  %v627_v32 = vshrl.u32 %v2501_v41, %v626_v13  ;;  %v637_v3 = vshll.u32 %v2504_v55, %v625_v46  ;;  %v506_v51 = vld [vmem:[%s4329_s3] sm:$0x3] }
  0xd1   : > { %v638_v7 = vshrl.u32 %v2505_v57, %v626_v13  ;;  %v641_v9 = vshrl.u32 %v2506_v4, %v626_v13  ;;  %v872_v11 = vmul.u32 %v2717_v35, %v856_v33  ;;  %v640_v14 = vshll.u32 %v2505_v57, %v625_v46 }
  0xd2   : > { %v636_v12 = vor.u32 %v635_v1, %v634_v0  ;;  %vm643_vm10 = vcmp.lt.s32.totalorder %v2719_v36, 1  ;;  %vm874_vm11 = vc.u32 %v2752_v54, %v2755_v56  ;;  %v875_v15 = vadd.s32 1, %v2756_v59 }
  0xd3   : > { %v639_v16 = vor.u32 %v638_v7, %v637_v3  ;;  %vm644_vm12 = vcmp.lt.s32.totalorder %v2719_v36, 2  ;;  %v642_v17 = vor.u32 %v641_v9, %v640_v14  ;;  %vm645_vm13 = vcmp.lt.s32.totalorder %v2719_v36, 3 }
  0xd4   : > { %vm646_vm14 = vcmp.lt.s32.totalorder %v2719_v36, 4  ;;  %v651_v13 = vsel %vm643_vm10, %v630_v60, %v633_v63  ;;  %v876_v35 = vsel %vm874_vm11, %v875_v15, %v2756_v59  ;;  %v655_v20 = vsel %vm643_vm10, %v633_v63, %v636_v12 }
  0xd5   : > { %v648_v18 = vsel %vm646_vm14, %v636_v12, 2102212464  ;;  %v652_v46 = vsel %vm646_vm14, %v639_v16, 920167782  ;;  %v877_v21 = vadd.s32 %v876_v35, %v872_v11  ;;  %v647_v22 = vsel %vm643_vm10, %v627_v32, %v630_v60  ;;  %v302_v32 = vpop.permute.xlu1 %301 }
  0xd6   : > { %v653_v23 = vsel %vm645_vm13, %v636_v12, %v652_v46  ;;  %v656_v26 = vsel %vm646_vm14, %v642_v17, 1326507024  ;;  %v649_v27 = vsel %vm645_vm13, %v633_v63, %v648_v18  ;;  %v1239_v31 = vadd.s32 1, %v2728_v47 }
  0xd7   : > { %v654_v29 = vsel %vm644_vm12, %v651_v13, %v653_v23  ;;  %v657_v30 = vsel %vm645_vm13, %v639_v16, %v656_v26  ;;  %v878_v33 = vadd.s32 536870912, %v877_v21  ;;  %v650_v47 = vsel %vm644_vm12, %v647_v22, %v649_v27 }
  0xd8   : > { %v658_v34 = vsel %vm644_vm12, %v655_v20, %v657_v30  ;;  %v2781_v40 = vmul.u32.u64.low %v2721_v37, %v654_v29  ;;  %v2782_v45 = vmul.u32.u64.high %v2721_v37, %v654_v29, %v2781_v40  ;;  %vm1240_vm15 = vcmp.gt.s32.totalorder %v1239_v31, 0 }
  0xd9   : > { %v2789_v59 = vmul.u32.u64.low %v2721_v37, %v658_v34  ;;  %v2790_v60 = vmul.u32.u64.high %v2721_v37, %v658_v34, %v2789_v59  ;;  %v879_v63 = vshrl.u32 %v878_v33, 30  ;;  %v1241_v0 = vsel %vm1240_vm15, %v1239_v31, 0 }
  0xda   : > { %v2796_v1 = vadd.f32 %v2669_v58, %v2715_v25  ;;  %v1243_v3 = vand.u32 31, %v1241_v0  ;;  %vm507_vm0 = vcmp.ne.s32.totalorder %v506_v51, 0  ;;  %v669_v9 = vadd.s32 1, %v2782_v45 }
  0xdb   : > { %v880_v7 = vshll.u32 %v879_v63, 30  ;;  %v1237_v11 = vor.u32 8388608, %v2725_v38  ;;  %v666_v12 = vmul.u32 %v2721_v37, %v650_v47  ;;  %vm668_vm1 = vc.u32 %v2790_v60, %v2781_v40 }
  0xdc   : > { %v1244_v36 = vsub.s32 32, %v1243_v3  ;;  %v2805_v14 = vsel %vm414_vm3, %v2637_v42, %v302_v32  ;;  %v670_v15 = vsel %vm668_vm1, %v669_v9, %v2782_v45  ;;  %v1023_v16 = vand.u32 2147483647, %v2796_v1 }
  0xdd   : > { %v2807_v25 = vsub.s32 %v877_v21, %v880_v7  ;;  %v2507_v17 = vmov 0   ;;  %v671_v37 = vadd.s32 %v670_v15, %v666_v12  ;;  %v1026_v38 = vand.u32 2139095040, %v2796_v1 }
  0xde   : > { %v2811_v13 = vsel %vm507_vm0, 1, %v2507_v17  ;;  %v873_v35 = vadd.s32 %v2755_v56, %v2752_v54  ;;  %v2818_v18 = vshll.u32 %v1237_v11, 8  ;;  %v2822_v46 = vmul.f32 %v2662_v53, %v2805_v14 }
  0xdf   : > { %v883_v42 = vsub.s32 0, %v2807_v25  ;;  %v903_v20 = vsub.s32 4, %v879_v63  ;;  %v672_v21 = vadd.s32 536870912, %v671_v37  ;;  %v2824_v22 = vshrl.u32 %v1241_v0, 5 }
  0xe0   : > { %v1253_v23 = vshrl.u32 %v2504_v55, %v1244_v36  ;;  %v1247_v27 = vshrl.u32 %v4333_v50, %v1244_v36  ;;  %v1250_v54 = vshrl.u32 %v4335_v52, %v1244_v36  ;;  %v2832_v56 = vand.u32 8388607, %v1023_v16 }
  0xe1   : > { %v2280_v26 = vmin.u32 %v883_v42, %v2807_v25  ;;  %v2834_v29 = vshrl.u32 %v672_v21, 30  ;;  %v1252_v30 = vshll.u32 %v4335_v52, %v1243_v3  ;;  %v1256_v31 = vshrl.u32 %v2505_v57, %v1244_v36 }
  0xe2   : > { %v1027_v33 = vshrl.u32 %v1026_v38, 23  ;;  %v1246_v45 = vshll.u32 %v2501_v41, %v1243_v3  ;;  %v1249_v51 = vshll.u32 %v4333_v50, %v1243_v3  ;;  %v1255_v59 = vshll.u32 %v2504_v55, %v1243_v3 }
  0xe3   : > { %v885_v34 = vclz %v2280_v26  ;;  %v2843_v47 = vsel %vm819_vm2, %v903_v20, %v879_v63  ;;  %v674_v0 = vshll.u32 %v2834_v29, 30  ;;  %v1254_v32 = vor.u32 %v1253_v23, %v1252_v30 }
  0xe4   : > { %v1259_v7 = vshrl.u32 %v2506_v4, %v1244_v36  ;;  %v1248_v11 = vor.u32 %v1247_v27, %v1246_v45  ;;  %v1251_v12 = vor.u32 %v1250_v54, %v1249_v51  ;;  %v1257_v15 = vor.u32 %v1256_v31, %v1255_v59 }
  0xe5   : > { %v2281_v9 = vadd.s32 4294967294, %v885_v34  ;;  %v2847_v17 = vsub.s32 %v671_v37, %v674_v0  ;;  %v1245_v38 = vshrl.u32 %v2501_v41, %v1244_v36  ;;  %v1258_v42 = vshll.u32 %v2505_v57, %v1243_v3 }
  0xe6   : > { %vm1261_vm4 = vcmp.lt.s32.totalorder %v2824_v22, 1  ;;  %v697_v20 = vsub.s32 4, %v2834_v29  ;;  %vm1262_vm7 = vcmp.lt.s32.totalorder %v2824_v22, 2  ;;  %vm1264_vm8 = vcmp.lt.s32.totalorder %v2824_v22, 4 }
  0xe7   : > { %vm2282_vm6 = vcmp.lt.s32.totalorder %v2281_v9, 0  ;;  %vm613_vm9 = vcmp.lt.s32.totalorder %v2689_v6, 0  ;;  %v677_v3 = vsub.s32 0, %v2847_v17  ;;  %v1260_v36 = vor.u32 %v1259_v7, %v1258_v42 }
  0xe8   : > { %v888_v37 = vsel %vm2282_vm6, 0, %v2281_v9  ;;  %v1266_v21 = vsel %vm1264_vm8, %v1254_v32, 2102212464  ;;  %v1269_v26 = vsel %vm1261_vm4, %v1248_v11, %v1251_v12  ;;  %v1270_v27 = vsel %vm1264_vm8, %v1257_v15, 920167782 }
  0xe9   : > { %v889_v2 = vsub.s32 32, %v888_v37  ;;  %v893_v23 = vsub.s32 4294967266, %v888_v37  ;;  %v890_v54 = vshll.u32 %v2807_v25, %v888_v37  ;;  %v2272_v30 = vmin.u32 %v677_v3, %v2847_v17 }
  0xea   : > { %vm1263_vm10 = vcmp.lt.s32.totalorder %v2824_v22, 3  ;;  %v1265_v31 = vsel %vm1261_vm4, %v1245_v38, %v1248_v11  ;;  %v1273_v59 = vsel %vm1261_vm4, %v1251_v12, %v1254_v32  ;;  %vm2878_vm11 = vcmp.le.f32.partialorder %v611_v10, 0.7853982 }
  0xeb   : > { %v891_v34 = vshrl.u32 %v873_v35, %v889_v2  ;;  %v894_v45 = vadd.s32 127, %v893_v23  ;;  %v1271_v51 = vsel %vm1263_vm10, %v1254_v32, %v1270_v27  ;;  %v679_v25 = vclz %v2272_v30 }
  0xec   : > { %v1267_v7 = vsel %vm1263_vm10, %v1251_v12, %v1266_v21  ;;  %v1272_v9 = vsel %vm1262_vm7, %v1269_v26, %v1271_v51  ;;  %v1274_v11 = vsel %vm1264_vm8, %v1260_v36, 1326507024  ;;  %v2287_v37 = vadd.s32 4294967169, %v1027_v33 }
  0xed   : > { %v892_v35 = vor.u32 %v891_v34, %v890_v54  ;;  %v895_v38 = vshll.u32 %v894_v45, 23  ;;  %v1275_v42 = vsel %vm1263_vm10, %v1257_v15, %v1274_v11  ;;  %v2273_v3 = vadd.s32 4294967294, %v679_v25 }
  0xee   : > { %v1276_v32 = vsel %vm1262_vm7, %v1273_v59, %v1275_v42  ;;  %v2889_v10 = vmul.u32.u64.low %v2818_v18, %v1272_v9  ;;  %v2890_v2 = vmul.u32.u64.high %v2818_v18, %v1272_v9, %v2889_v10  ;;  %v1268_v12 = vsel %vm1262_vm7, %v1265_v31, %v1267_v7 }
  0xef   : > { %v896_v23 = vor.u32 4788187, %v895_v38  ;;  %v2895_v21 = vmul.u32.u64.low %v2818_v18, %v1276_v32  ;;  %v2896_v26 = vmul.u32.u64.high %v2818_v18, %v1276_v32, %v2895_v21  ;;  %v906_v33 = vsel %vm2854_vm5, 0, %v2843_v47 }
  0xf0   : > { %v667_v15 = vadd.s32 %v2781_v40, %v2790_v60  ;;  %vm2274_vm12 = vcmp.lt.s32.totalorder %v2273_v3, 0  ;;  %v1033_v36 = vadd.s32 1, %v2287_v37  ;;  %v899_v54 = vcvt.s32.f32 %v892_v35 }
  0xf1   : > { %v897_v27 = vand.u32 2147483647, %v896_v23  ;;  %v682_v30 = vsel %vm2274_vm12, 0, %v2273_v3  ;;  %v698_v22 = vsel %vm613_vm9, %v697_v20, %v2834_v29  ;;  %v1284_v45 = vmul.u32 %v2818_v18, %v1268_v12  ;;  %v300_v3 = vpop.permute.xlu0 %299 }
  0xf2   : > { %v683_v31 = vsub.s32 32, %v682_v30  ;;  %v687_v34 = vsub.s32 4294967266, %v682_v30  ;;  %v1287_v51 = vadd.s32 1, %v2890_v2  ;;  %v684_v47 = vshll.u32 %v2847_v17, %v682_v30 }
  0xf3   : > { %v900_v59 = vmul.f32 %v899_v54, %v897_v27  ;;  %vm1286_vm13 = vc.u32 %v2896_v26, %v2889_v10  ;;  %vm1034_vm14 = vcmp.gt.s32.totalorder %v1033_v36, 0  ;;  %v700_v29 = vsel %vm2878_vm11, 0, %v698_v22 }
  0xf4   : > { %v685_v40 = vshrl.u32 %v667_v15, %v683_v31  ;;  %v688_v60 = vadd.s32 127, %v687_v34  ;;  %v1288_v25 = vsel %vm1286_vm13, %v1287_v51, %v2890_v2  ;;  %v1035_v7 = vsel %vm1034_vm14, %v1033_v36, 0 }
  0xf5   : > { %v901_v9 = vxor.u32 2147483648, %v900_v59  ;;  %v1289_v20 = vadd.s32 %v1288_v25, %v1284_v45  ;;  %v1037_v11 = vand.u32 31, %v1035_v7  ;;  %v2164_v38 = vrot.slane %v2811_v13, %v2643_v44 }
  0xf6   : > { %v686_v18 = vor.u32 %v685_v40, %v684_v47  ;;  %v689_v35 = vshll.u32 %v688_v60, 23  ;;  %v2920_v2 = vand.u32 3, %v906_v33  ;;  %v2922_v12 = vand.u32 3, %v700_v29 }
  0xf7   : > { %v902_v17 = vsel %vm819_vm2, %v901_v9, %v900_v59  ;;  %v1290_v42 = vadd.s32 536870912, %v1289_v20  ;;  %v1038_v37 = vsub.s32 32, %v1037_v11  ;;  %v1031_v44 = vor.u32 8388608, %v2832_v56 }
  0xf8   : > { %v905_v32 = vsel %vm2854_vm5, %v2686_v5, %v902_v17  ;;  %v690_v23 = vor.u32 4788187, %v689_v35  ;;  %v2929_v15 = vadd.f32 %v2669_v58, %v2822_v46  ;;  %v693_v27 = vcvt.s32.f32 %v686_v18 }
  0xf9   : > { %2420 = vcosq.f32 %v905_v32  ;;  %v2924_v21 = vshrl.u32 %v1290_v42, 30  ;;  %v2933_v63 = vsel %vm414_vm3, %v2640_v43, %v300_v3  ;;  %v2936_v33 = vadd.s32 %v2889_v10, %v2896_v26 }
  0xfa   : > { %2422 = vsinq.f32 %v905_v32  ;;  %v691_v36 = vand.u32 2147483647, %v690_v23  ;;  %v2939_v30 = vshrl.u32 %v1035_v7, 5  ;;  %v1047_v56 = vshrl.u32 %v2504_v55, %v1038_v37 }
  0xfb   : > { %v1292_v54 = vshll.u32 %v2924_v21, 30  ;;  %v1041_v46 = vshrl.u32 %v4333_v50, %v1038_v37  ;;  %v1044_v31 = vshrl.u32 %v4335_v52, %v1038_v37  ;;  %v1050_v34 = vshrl.u32 %v2505_v57, %v1038_v37 }
  0xfc   : > { %v694_v22 = vmul.f32 %v693_v27, %v691_v36  ;;  %vm915_vm15 = vcmp.eq.s32.totalorder %v2920_v2, 2  ;;  %v1040_v10 = vshll.u32 %v2501_v41, %v1037_v11  ;;  %v1046_v26 = vshll.u32 %v4335_v52, %v1037_v11 }
  0xfd   : > { %v2946_v43 = vsub.s32 %v1289_v20, %v1292_v54  ;;  %v2950_v45 = vshll.u32 %v1031_v44, 8  ;;  %vm912_vm0 = vcmp.eq.s32.totalorder %v2920_v2, 0  ;;  %v1043_v59 = vshll.u32 %v4333_v50, %v1037_v11 }
  0xfe   : > { %v695_v51 = vxor.u32 2147483648, %v694_v22  ;;  %v1049_v47 = vshll.u32 %v2504_v55, %v1037_v11  ;;  %v1053_v40 = vshrl.u32 %v2506_v4, %v1038_v37  ;;  %vm2956_vm1 = vcmp.eq.s32.totalorder %v2164_v38, 1 }
  0xff   : > { %vm911_vm2 = vcmp.lt.s32.totalorder %v2920_v2, 2  ;;  %v1295_v25 = vsub.s32 0, %v2946_v43  ;;  %v1048_v7 = vor.u32 %v1047_v56, %v1046_v26  ;;  %v1052_v9 = vshll.u32 %v2505_v57, %v1037_v11 }
 0x100   : > { %v1641_v29 = vand.u32 2147483647, %v2929_v15  ;;  %vm909_vm4 = vweird.f32 %v2686_v5  ;;  %v696_v20 = vsel %vm613_vm9, %v695_v51, %v694_v22  ;;  %v1042_v18 = vor.u32 %v1041_v46, %v1040_v10 }
 0x101   : > { %v1045_v35 = vor.u32 %v1044_v31, %v1043_v59  ;;  %v1051_v38 = vor.u32 %v1050_v34, %v1049_v47  ;;  %v699_v17 = vsel %vm2878_vm11, %v2689_v6, %v696_v20  ;;  %v2296_v42 = vmin.u32 %v1295_v25, %v2946_v43 }
 0x102   : > { %v1039_v3 = vshrl.u32 %v2501_v41, %v1038_v37  ;;  %v1054_v32 = vor.u32 %v1053_v40, %v1052_v9  ;;  %vm423_vm5 = vcmask 654336   ;;  %2424 = vcosq.f32 %v699_v17 }
 0x103   : > { %vm1055_vm6 = vcmp.lt.s32.totalorder %v2939_v30, 1  ;;  %vm1056_vm7 = vcmp.lt.s32.totalorder %v2939_v30, 2  ;;  %vm1058_vm8 = vcmp.lt.s32.totalorder %v2939_v30, 4  ;;  %v2421_v11 = vpop.eup %2420  ;;  %2426 = vsinq.f32 %v699_v17 }
 0x104   : > { %v1297_v23 = vclz %v2296_v42  ;;  %vm1057_vm9 = vcmp.lt.s32.totalorder %v2939_v30, 3  ;;  %v1060_v0 = vsel %vm1058_vm8, %v1048_v7, 2102212464  ;;  %v2423_v44 = vpop.eup %2422  ;;  %v916_v37 = vxor.u32 2147483648, %v2421_v11 }
 0x105   : > { %v1063_v36 = vsel %vm1055_vm6, %v1042_v18, %v1045_v35  ;;  %v1064_v27 = vsel %vm1058_vm8, %v1051_v38, 920167782  ;;  %v1067_v54 = vsel %vm1055_vm6, %v1045_v35, %v1048_v7  ;;  %v913_v56 = vxor.u32 2147483648, %v2423_v44 }
 0x106   : > { %vm1231_vm10 = vcmp.lt.s32.totalorder %v2705_v19, 0  ;;  %v2297_v22 = vadd.s32 4294967294, %v1297_v23  ;;  %v1065_v46 = vsel %vm1057_vm9, %v1048_v7, %v1064_v27  ;;  %v1068_v31 = vsel %vm1058_vm8, %v1054_v32, 1326507024 }
 0x107   : > { %v917_v34 = vsel %vm915_vm15, %v916_v37, %v2423_v44  ;;  %v1059_v10 = vsel %vm1055_vm6, %v1039_v3, %v1042_v18  ;;  %v1061_v26 = vsel %vm1057_vm9, %v1045_v35, %v1060_v0  ;;  %v1069_v51 = vsel %vm1057_vm9, %v1051_v38, %v1068_v31 }
 0x108   : > { %v914_v59 = vsel %vm912_vm0, %v2421_v11, %v913_v56  ;;  %vm2298_vm11 = vcmp.lt.s32.totalorder %v2297_v22, 0  ;;  %v1066_v47 = vsel %vm1056_vm7, %v1063_v36, %v1065_v46  ;;  %v1070_v40 = vsel %vm1056_vm7, %v1067_v54, %v1069_v51 }
 0x109   : > { %v918_v25 = vsel %vm911_vm2, %v914_v59, %v917_v34  ;;  %vm705_vm12 = vcmp.lt.s32.totalorder %v2922_v12, 2  ;;  %v1300_v7 = vsel %vm2298_vm11, 0, %v2297_v22  ;;  %vm703_vm13 = vweird.f32 %v2689_v6 }
 0x10a   : > { %v3013_v9 = vmul.u32.u64.low %v2950_v45, %v1070_v40  ;;  %v3014_v20 = vmul.u32.u64.high %v2950_v45, %v1070_v40, %v3013_v9  ;;  %v919_v18 = vsel %vm909_vm4, nan, %v918_v25  ;;  %v1301_v35 = vsub.s32 32, %v1300_v7 }
 0x10b   : > { %v1305_v38 = vsub.s32 4294967266, %v1300_v7  ;;  %v1315_v17 = vsub.s32 4, %v2924_v21  ;;  %v2170_v2 = vsel %vm2956_vm1, %v2672_v61, %v919_v18  ;;  %v1062_v42 = vsel %vm1056_vm7, %v1059_v10, %v1061_v26 }
 0x10c   : > { %v3026_v3 = vmul.u32.u64.low %v2950_v45, %v1066_v47  ;;  %v3027_v32 = vmul.u32.u64.high %v2950_v45, %v1066_v47, %v3026_v3  ;;  %2186 = vst.msk [vmem:[%s3007_s12 + $0x18] sm:$0xff] %vm423_vm5, %v2170_v2  ;;  %v1302_v5 = vshll.u32 %v2946_v43, %v1300_v7  ;;  %v1303_v11 = vshrl.u32 %v2936_v33, %v1301_v35  ;;  %v2425_v44 = vpop.eup %2424 }
 0x10d   : > { %v1306_v23 = vadd.s32 127, %v1305_v38  ;;  %v1644_v0 = vand.u32 2139095040, %v2929_v15  ;;  %vm706_vm14 = vcmp.eq.s32.totalorder %v2922_v12, 0  ;;  %vm709_vm15 = vcmp.eq.s32.totalorder %v2922_v12, 2  ;;  %v2427_v37 = vpop.eup %2426 }
 0x10e   : > { %vm1080_vm0 = vc.u32 %v3014_v20, %v3026_v3  ;;  %v471_v30 = vmul.f32 %v2662_v53, %v2933_v63  ;;  %v710_v36 = vxor.u32 2147483648, %v2425_v44  ;;  %v1304_v27 = vor.u32 %v1303_v11, %v1302_v5 }
 0x10f   : > { %v1307_v54 = vshll.u32 %v1306_v23, 23  ;;  %v1645_v43 = vshrl.u32 %v1644_v0, 23  ;;  %v707_v56 = vxor.u32 2147483648, %v2427_v37  ;;  %v1316_v33 = vsel %vm1231_vm10, %v1315_v17, %v2924_v21 }
 0x110   : > { %v1078_v22 = vmul.u32 %v2950_v45, %v1062_v42  ;;  %v1081_v46 = vadd.s32 1, %v3027_v32  ;;  %v711_v31 = vsel %vm709_vm15, %v710_v36, %v2427_v37  ;;  %v1648_v26 = vand.u32 8388607, %v1641_v29 }
 0x111   : > { %v1308_v34 = vor.u32 4788187, %v1307_v54  ;;  %v2311_v10 = vadd.s32 4294967169, %v1645_v43  ;;  %v708_v51 = vsel %vm706_vm14, %v2425_v44, %v707_v56  ;;  %v1311_v59 = vcvt.s32.f32 %v1304_v27 }
 0x112   : > { %v1082_v47 = vsel %vm1080_vm0, %v1081_v46, %v3027_v32  ;;  %v3052_v21 = vadd.f32 %v2669_v58, %v471_v30  ;;  %v712_v45 = vsel %vm705_vm12, %v708_v51, %v711_v31  ;;  %vm3060_vm2 = vcmp.le.f32.partialorder %v1229_v28, 0.7853982  ;;  %v306_v28 = vpop.permute.xlu1 %305 }
 0x113   : > { %v1309_v40 = vand.u32 2147483647, %v1308_v34  ;;  %v1083_v25 = vadd.s32 %v1082_v47, %v1078_v22  ;;  %v1651_v7 = vadd.s32 1, %v2311_v10  ;;  %v713_v9 = vsel %vm703_vm13, nan, %v712_v45 }
 0x114   : > { %v2168_v35 = vsel %vm2956_vm1, %v2675_v62, %v713_v9  ;;  %v1318_v12 = vsel %vm3060_vm2, 0, %v1316_v33  ;;  %v1649_v6 = vor.u32 8388608, %v1648_v26  ;;  %v1435_v42 = vand.u32 2147483647, %v3052_v21 }
 0x115   : > { %v1312_v38 = vmul.f32 %v1311_v59, %v1309_v40  ;;  %v1084_v17 = vadd.s32 536870912, %v1083_v25  ;;  %vm1652_vm4 = vcmp.gt.s32.totalorder %v1651_v7, 0  ;;  %2184 = vst.msk [vmem:[%s3007_s12 + $0x8] sm:$0xff] %vm423_vm5, %v2168_v35  ;;  %v1438_v23 = vand.u32 2139095040, %v3052_v21 }
 0x116   : > { %v1653_v2 = vsel %vm1652_vm4, %v1651_v7, 0  ;;  %v3080_v37 = vsel %vm414_vm3, %v2649_v48, %v306_v28  ;;  %v3085_v27 = vand.u32 3, %v1318_v12  ;;  %v3088_v54 = vadd.s32 %v3026_v3, %v3014_v20 }
 0x117   : > { %v1313_v32 = vxor.u32 2147483648, %v1312_v38  ;;  %v3072_v5 = vshrl.u32 %v1084_v17, 30  ;;  %v1655_v11 = vand.u32 31, %v1653_v2  ;;  %v3090_v43 = vshll.u32 %v1649_v6, 8 }
 0x118   : > { %v1439_v33 = vshrl.u32 %v1438_v23, 23  ;;  %v3096_v22 = vand.u32 8388607, %v1435_v42  ;;  %v1654_v3 = vshrl.u32 %v1653_v2, 5  ;;  %vm1327_vm6 = vcmp.eq.s32.totalorder %v3085_v27, 2 }
 0x119   : > { %v1314_v0 = vsel %vm1231_vm10, %v1313_v32, %v1312_v38  ;;  %v1086_v44 = vshll.u32 %v3072_v5, 30  ;;  %v1656_v30 = vsub.s32 32, %v1655_v11  ;;  %v1658_v48 = vshll.u32 %v2501_v41, %v1655_v11 }
 0x11a   : > { %v1317_v36 = vsel %vm3060_vm2, %v2705_v19, %v1314_v0  ;;  %v1661_v34 = vshll.u32 %v4333_v50, %v1655_v11  ;;  %v1664_v51 = vshll.u32 %v4335_v52, %v1655_v11  ;;  %v1667_v59 = vshll.u32 %v2504_v55, %v1655_v11 }
 0x11b   : > { %2428 = vcosq.f32 %v1317_v36  ;;  %v3092_v56 = vsub.s32 %v1083_v25, %v1086_v44  ;;  %v1659_v46 = vshrl.u32 %v4333_v50, %v1656_v30  ;;  %v1662_v31 = vshrl.u32 %v4335_v52, %v1656_v30 }
 0x11c   : > { %2430 = vsinq.f32 %v1317_v36  ;;  %v1665_v10 = vshrl.u32 %v2504_v55, %v1656_v30  ;;  %v1668_v47 = vshrl.u32 %v2505_v57, %v1656_v30  ;;  %v1657_v40 = vshrl.u32 %v2501_v41, %v1656_v30 }
 0x11d   : > { %v1089_v20 = vsub.s32 0, %v3092_v56  ;;  %v1660_v26 = vor.u32 %v1659_v46, %v1658_v48  ;;  %v1663_v25 = vor.u32 %v1662_v31, %v1661_v34  ;;  %v2303_v7 = vadd.s32 4294967169, %v1439_v33 }
 0x11e   : > { %vm1324_vm7 = vcmp.eq.s32.totalorder %v3085_v27, 0  ;;  %v1666_v9 = vor.u32 %v1665_v10, %v1664_v51  ;;  %v1669_v18 = vor.u32 %v1668_v47, %v1667_v59  ;;  %v1670_v35 = vshll.u32 %v2505_v57, %v1655_v11 }
 0x11f   : > { %v2288_v45 = vmin.u32 %v1089_v20, %v3092_v56  ;;  %v1671_v38 = vshrl.u32 %v2506_v4, %v1656_v30  ;;  %vm1323_vm8 = vcmp.lt.s32.totalorder %v3085_v27, 2  ;;  %vm1673_vm9 = vcmp.lt.s32.totalorder %v1654_v3, 1 }
 0x120   : > { %vm1674_vm10 = vcmp.lt.s32.totalorder %v1654_v3, 2  ;;  %vm1676_vm11 = vcmp.lt.s32.totalorder %v1654_v3, 4  ;;  %vm1321_vm12 = vweird.f32 %v2705_v19  ;;  %vm1675_vm13 = vcmp.lt.s32.totalorder %v1654_v3, 3  ;;  %v304_v19 = vpop.permute.xlu0 %303 }
 0x121   : > { %v1091_v17 = vclz %v2288_v45  ;;  %v1672_v12 = vor.u32 %v1671_v38, %v1670_v35  ;;  %v1677_v6 = vsel %vm1673_vm9, %v1657_v40, %v1660_v26  ;;  %v1678_v2 = vsel %vm1676_vm11, %v1666_v9, 2102212464 }
 0x122   : > { %v1679_v32 = vsel %vm1675_vm13, %v1663_v25, %v1678_v2  ;;  %v1682_v23 = vsel %vm1676_vm11, %v1669_v18, 920167782  ;;  %v1685_v0 = vsel %vm1673_vm9, %v1663_v25, %v1666_v9  ;;  %v1681_v44 = vsel %vm1673_vm9, %v1660_v26, %v1663_v25 }
 0x123   : > { %v2289_v28 = vadd.s32 4294967294, %v1091_v17  ;;  %v1683_v11 = vsel %vm1675_vm13, %v1666_v9, %v1682_v23  ;;  %v1686_v36 = vsel %vm1676_vm11, %v1672_v12, 1326507024  ;;  %v1445_v30 = vadd.s32 1, %v2303_v7 }
 0x124   : > { %v1680_v48 = vsel %vm1674_vm10, %v1677_v6, %v1679_v32  ;;  %v1687_v46 = vsel %vm1675_vm13, %v1669_v18, %v1686_v36  ;;  %v1443_v31 = vor.u32 8388608, %v3096_v22  ;;  %v1684_v26 = vsel %vm1674_vm10, %v1681_v44, %v1683_v11 }
 0x125   : > { %v2429_v33 = vpop.eup %2428  ;;  %vm2290_vm14 = vcmp.lt.s32.totalorder %v2289_v28, 0  ;;  %v1688_v51 = vsel %vm1674_vm10, %v1685_v0, %v1687_v46  ;;  %vm1446_vm15 = vcmp.gt.s32.totalorder %v1445_v30, 0  ;;  %vm1025_vm0 = vcmp.lt.s32.totalorder %v2796_v1, 0 }
 0x126   : > { %v2431_v20 = vpop.eup %2430  ;;  %v1328_v34 = vxor.u32 2147483648, %v2429_v33  ;;  %v1094_v10 = vsel %vm2290_vm14, 0, %v2289_v28  ;;  %v3122_v25 = vmul.u32.u64.low %v3090_v43, %v1688_v51  ;;  %v3123_v7 = vmul.u32.u64.high %v3090_v43, %v1688_v51, %v3122_v25 }
 0x127   : > { %v1325_v59 = vxor.u32 2147483648, %v2431_v20  ;;  %v1095_v47 = vsub.s32 32, %v1094_v10  ;;  %v1099_v45 = vsub.s32 4294967266, %v1094_v10  ;;  %v1447_v9 = vsel %vm1446_vm15, %v1445_v30, 0 }
 0x128   : > { %v1329_v40 = vsel %vm1327_vm6, %v1328_v34, %v2431_v20  ;;  %v1096_v35 = vshll.u32 %v3092_v56, %v1094_v10  ;;  %v3133_v12 = vmul.u32.u64.low %v3090_v43, %v1684_v26  ;;  %v3134_v6 = vmul.u32.u64.high %v3090_v43, %v1684_v26, %v3133_v12 }
 0x129   : > { %v1326_v18 = vsel %vm1324_vm7, %v2429_v33, %v1325_v59  ;;  %v1097_v38 = vshrl.u32 %v3088_v54, %v1095_v47  ;;  %v1100_v3 = vadd.s32 127, %v1099_v45  ;;  %v1449_v2 = vand.u32 31, %v1447_v9 }
 0x12a   : > { %v1330_v17 = vsel %vm1323_vm8, %v1326_v18, %v1329_v40  ;;  %v1109_v0 = vsub.s32 4, %v3072_v5  ;;  %v1696_v27 = vmul.u32 %v3090_v43, %v1680_v48  ;;  %v3144_v56 = vshrl.u32 %v1447_v9, 5 }
 0x12b   : > { %v1331_v28 = vsel %vm1321_vm12, nan, %v1330_v17  ;;  %v1098_v32 = vor.u32 %v1097_v38, %v1096_v35  ;;  %v1101_v23 = vshll.u32 %v1100_v3, 23  ;;  %v1450_v44 = vsub.s32 32, %v1449_v2 }
 0x12c   : > { %v2174_v54 = vsel %vm2956_vm1, %v2692_v8, %v1331_v28  ;;  %vm3150_vm2 = vcmp.le.f32.partialorder %v1023_v16, 0.7853982  ;;  %vm1698_vm4 = vc.u32 %v3123_v7, %v3133_v12  ;;  %v1452_v30 = vshll.u32 %v2501_v41, %v1449_v2 }
 0x12d   : > { %2190 = vst.msk [vmem:[%s3007_s12 + $0x38] sm:$0xff] %vm423_vm5, %v2174_v54  ;;  %v1102_v11 = vor.u32 4788187, %v1101_v23  ;;  %v1105_v36 = vcvt.s32.f32 %v1098_v32  ;;  %v1699_v43 = vadd.s32 1, %v3134_v6  ;;  %v1453_v33 = vshrl.u32 %v4333_v50, %v1450_v44 }
 0x12e   : > { %v1455_v48 = vshll.u32 %v4333_v50, %v1449_v2  ;;  %v1456_v46 = vshrl.u32 %v4335_v52, %v1450_v44  ;;  %v1458_v16 = vshll.u32 %v4335_v52, %v1449_v2  ;;  %v1459_v34 = vshrl.u32 %v2504_v55, %v1450_v44 }
 0x12f   : > { %v1103_v20 = vand.u32 2147483647, %v1102_v11  ;;  %v1461_v10 = vshll.u32 %v2504_v55, %v1449_v2  ;;  %v1700_v51 = vsel %vm1698_vm4, %v1699_v43, %v3134_v6  ;;  %v1454_v59 = vor.u32 %v1453_v33, %v1452_v30 }
 0x130   : > { %v1457_v47 = vor.u32 %v1456_v46, %v1455_v48  ;;  %v1462_v45 = vshrl.u32 %v2505_v57, %v1450_v44  ;;  %v1701_v40 = vadd.s32 %v1700_v51, %v1696_v27  ;;  %v1460_v25 = vor.u32 %v1459_v34, %v1458_v16 }
 0x131   : > { %v1106_v26 = vmul.f32 %v1105_v36, %v1103_v20  ;;  %v477_v9 = vmul.f32 %v2662_v53, %v3080_v37  ;;  %v1110_v18 = vsel %vm1025_vm0, %v1109_v0, %v3072_v5  ;;  %v1464_v38 = vshll.u32 %v2505_v57, %v1449_v2 }
 0x132   : > { %v1463_v35 = vor.u32 %v1462_v45, %v1461_v10  ;;  %v1465_v3 = vshrl.u32 %v2506_v4, %v1450_v44  ;;  %v1702_v6 = vadd.s32 536870912, %v1701_v40  ;;  %vm1467_vm6 = vcmp.lt.s32.totalorder %v3144_v56, 1 }
 0x133   : > { %v1107_v17 = vxor.u32 2147483648, %v1106_v26  ;;  %vm1470_vm7 = vcmp.lt.s32.totalorder %v3144_v56, 4  ;;  %vm1469_vm8 = vcmp.lt.s32.totalorder %v3144_v56, 3  ;;  %v1475_v32 = vsel %vm1467_vm6, %v1454_v59, %v1457_v47 }
 0x134   : > { %v1466_v28 = vor.u32 %v1465_v3, %v1464_v38  ;;  %v1476_v5 = vsel %vm1470_vm7, %v1463_v35, 920167782  ;;  %v1703_v23 = vshrl.u32 %v1702_v6, 30  ;;  %v1451_v0 = vshrl.u32 %v2501_v41, %v1450_v44 }
 0x135   : > { %v1108_v2 = vsel %vm1025_vm0, %v1107_v17, %v1106_v26  ;;  %v1477_v54 = vsel %vm1469_vm8, %v1460_v25, %v1476_v5  ;;  %vm1468_vm9 = vcmp.lt.s32.totalorder %v3144_v56, 2  ;;  %v1472_v11 = vsel %vm1470_vm7, %v1460_v25, 2102212464 }
 0x136   : > { %v1111_v27 = vsel %vm3150_vm2, %v2796_v1, %v1108_v2  ;;  %v1479_v36 = vsel %vm1467_vm6, %v1457_v47, %v1460_v25  ;;  %v1704_v30 = vshll.u32 %v1703_v23, 30  ;;  %v1478_v44 = vsel %vm1468_vm9, %v1475_v32, %v1477_v54 }
 0x137   : > { %2432 = vcosq.f32 %v1111_v27  ;;  %v1480_v43 = vsel %vm1470_vm7, %v1466_v28, 1326507024  ;;  %v1483_v48 = vshll.u32 %v1443_v31, 8  ;;  %v3202_v46 = vadd.f32 %v2669_v58, %v477_v9 }
 0x138   : > { %2434 = vsinq.f32 %v1111_v27  ;;  %v1481_v33 = vsel %vm1469_vm8, %v1463_v35, %v1480_v43  ;;  %v1112_v20 = vsel %vm3150_vm2, 0, %v1110_v18  ;;  %v3206_v16 = vsub.s32 %v1701_v40, %v1704_v30 }
 0x139   : > { %v1482_v34 = vsel %vm1468_vm9, %v1479_v36, %v1481_v33  ;;  %v1471_v10 = vsel %vm1467_vm6, %v1451_v0, %v1454_v59  ;;  %v1473_v51 = vsel %vm1469_vm8, %v1457_v47, %v1472_v11  ;;  %v1116_v40 = vand.u32 3, %v1112_v20  ;;  %v3245_v33 = vpop.permute.xlu1 %317 }
 0x13a   : > { %v3214_v45 = vmul.u32.u64.low %v1483_v48, %v1482_v34  ;;  %v3215_v22 = vmul.u32.u64.high %v1483_v48, %v1482_v34, %v3214_v45  ;;  %v1707_v31 = vsub.s32 0, %v3206_v16  ;;  %v2056_v9 = vand.u32 2139095040, %v3202_v46 }
 0x13b   : > { %v3218_v26 = vmul.u32.u64.low %v1483_v48, %v1478_v44  ;;  %v3219_v25 = vmul.u32.u64.high %v1483_v48, %v1478_v44, %v3218_v26  ;;  %v1474_v59 = vsel %vm1468_vm9, %v1471_v10, %v1473_v51  ;;  %vm1115_vm10 = vweird.f32 %v2796_v1 }
 0x13c   : > { %v2312_v18 = vmin.u32 %v1707_v31, %v3206_v16  ;;  %v2053_v47 = vand.u32 2147483647, %v3202_v46  ;;  %v2057_v35 = vshrl.u32 %v2056_v9, 23  ;;  %v3230_v38 = vsel %vm414_vm3, %v2652_v49, %v304_v19 }
 0x13d   : > { %vm1492_vm11 = vc.u32 %v3215_v22, %v3218_v26  ;;  %vm1643_vm12 = vcmp.lt.s32.totalorder %v2929_v15, 0  ;;  %v1727_v17 = vsub.s32 4, %v1703_v23  ;;  %v1493_v6 = vadd.s32 1, %v3219_v25 }
 0x13e   : > { %v1709_v3 = vclz %v2312_v18  ;;  %vm1117_vm13 = vcmp.lt.s32.totalorder %v1116_v40, 2  ;;  %vm1118_vm14 = vcmp.eq.s32.totalorder %v1116_v40, 0  ;;  %v1490_v56 = vmul.u32 %v1483_v48, %v1474_v59 }
 0x13f   : > { %v2327_v28 = vadd.s32 4294967169, %v2057_v35  ;;  %vm1121_vm15 = vcmp.eq.s32.totalorder %v1116_v40, 2  ;;  %v1494_v2 = vsel %vm1492_vm11, %v1493_v6, %v3219_v25  ;;  %v475_v0 = vmul.f32 %v2662_v53, %v3230_v38  ;;  %v3274_v6 = vpop.permute.xlu1 %321 }
 0x140   : > { %v2313_v5 = vadd.s32 4294967294, %v1709_v3  ;;  %v1495_v27 = vadd.s32 %v1494_v2, %v1490_v56  ;;  %v2060_v11 = vand.u32 8388607, %v2053_v47  ;;  %v1697_v44 = vadd.s32 %v3133_v12, %v3123_v7  ;;  %v3267_v3 = vpop.permute.xlu0 %315 }
 0x141   : > { %v2433_v32 = vpop.eup %2432  ;;  %v2063_v36 = vadd.s32 1, %v2327_v28  ;;  %v3243_v43 = vsel %vm1643_vm12, %v1727_v17, %v1703_v23  ;;  %v3249_v45 = vadd.f32 %v2669_v58, %v475_v0  ;;  %vm3262_vm2 = vcmp.le.f32.partialorder %v1641_v29, 0.7853982 }
 0x142   : > { %v2435_v49 = vpop.eup %2434  ;;  %v1122_v54 = vxor.u32 2147483648, %v2433_v32  ;;  %vm2314_vm3 = vcmp.lt.s32.totalorder %v2313_v5, 0  ;;  %v1496_v20 = vadd.s32 536870912, %v1495_v27  ;;  %v2061_v23 = vor.u32 8388608, %v2060_v11 }
 0x143   : > { %v1119_v30 = vxor.u32 2147483648, %v2435_v49  ;;  %v1712_v53 = vsel %vm2314_vm3, 0, %v2313_v5  ;;  %vm2064_vm0 = vcmp.gt.s32.totalorder %v2063_v36, 0  ;;  %v1730_v17 = vsel %vm3262_vm2, 0, %v3243_v43 }
 0x144   : > { %v1123_v48 = vsel %vm1121_vm15, %v1122_v54, %v2435_v49  ;;  %v1713_v10 = vsub.s32 32, %v1712_v53  ;;  %v1717_v51 = vsub.s32 4294967266, %v1712_v53  ;;  %v3252_v12 = vshrl.u32 %v1496_v20, 30 }
 0x145   : > { %v1120_v34 = vsel %vm1118_vm14, %v2433_v32, %v1119_v30  ;;  %v2065_v31 = vsel %vm2064_vm0, %v2063_v36, 0  ;;  %v1714_v19 = vshll.u32 %v3206_v16, %v1712_v53  ;;  %v1491_v29 = vadd.s32 %v3218_v26, %v3215_v22 }
 0x146   : > { %v1124_v7 = vsel %vm1117_vm13, %v1120_v34, %v1123_v48  ;;  %v1715_v9 = vshrl.u32 %v1697_v44, %v1713_v10  ;;  %v1718_v18 = vadd.s32 127, %v1717_v51  ;;  %v1498_v40 = vshll.u32 %v3252_v12, 30  ;;  %v3295_v34 = vpop.permute.xlu0 %319 }
 0x147   : > { %v1125_v25 = vsel %vm1115_vm10, nan, %v1124_v7  ;;  %v2067_v35 = vand.u32 31, %v2065_v31  ;;  %v3279_v28 = vshrl.u32 %v2065_v31, 5  ;;  %v3282_v0 = vshll.u32 %v2061_v23, 8  ;;  %v3297_v31 = vpop.permute.xlu1 %325 }
 0x148   : > { %v2172_v59 = vsel %vm2956_vm1, %v2709_v24, %v1125_v25  ;;  %v1716_v1 = vor.u32 %v1715_v9, %v1714_v19  ;;  %v1719_v16 = vshll.u32 %v1718_v18, 23  ;;  %v3277_v56 = vsub.s32 %v1495_v27, %v1498_v40 }
 0x149   : > { %2188 = vst.msk [vmem:[%s3007_s12 + $0x28] sm:$0xff] %vm423_vm5, %v2172_v59  ;;  %v2068_v32 = vsub.s32 32, %v2067_v35  ;;  %v2070_v2 = vshll.u32 %v2501_v41, %v2067_v35  ;;  %v1847_v49 = vand.u32 2147483647, %v3249_v45  ;;  %v2073_v30 = vshll.u32 %v4333_v50, %v2067_v35 }
 0x14a   : > { %v1720_v5 = vor.u32 4788187, %v1719_v16  ;;  %v1723_v54 = vcvt.s32.f32 %v1716_v1  ;;  %v1501_v11 = vsub.s32 0, %v3277_v56  ;;  %v2076_v27 = vshll.u32 %v4335_v52, %v2067_v35 }
 0x14b   : > { %v2071_v36 = vshrl.u32 %v4333_v50, %v2068_v32  ;;  %v2074_v26 = vshrl.u32 %v4335_v52, %v2068_v32  ;;  %v2077_v44 = vshrl.u32 %v2504_v55, %v2068_v32  ;;  %v1521_v53 = vsub.s32 4, %v3252_v12 }
 0x14c   : > { %v1721_v22 = vand.u32 2147483647, %v1720_v5  ;;  %v2304_v48 = vmin.u32 %v1501_v11, %v3277_v56  ;;  %vm2085_vm4 = vcmp.lt.s32.totalorder %v3279_v28, 1  ;;  %v1850_v20 = vand.u32 2139095040, %v3249_v45 }
 0x14d   : > { %v2072_v51 = vor.u32 %v2071_v36, %v2070_v2  ;;  %v2075_v7 = vor.u32 %v2074_v26, %v2073_v30  ;;  %v2078_v23 = vor.u32 %v2077_v44, %v2076_v27  ;;  %v2069_v19 = vshrl.u32 %v2501_v41, %v2068_v32  ;;  %v3321_v26 = vpop.permute.xlu0 %323 }
 0x14e   : > { %v1724_v10 = vmul.f32 %v1723_v54, %v1721_v22  ;;  %v1503_v25 = vclz %v2304_v48  ;;  %v2079_v9 = vshll.u32 %v2504_v55, %v2067_v35  ;;  %v2080_v18 = vshrl.u32 %v2505_v57, %v2068_v32  ;;  %v3326_v48 = vpop.permute.xlu1 %329 }
 0x14f   : > { %v2082_v40 = vshll.u32 %v2505_v57, %v2067_v35  ;;  %v2083_v1 = vshrl.u32 %v2506_v4, %v2068_v32  ;;  %vm2088_vm6 = vcmp.lt.s32.totalorder %v3279_v28, 4  ;;  %vm2087_vm7 = vcmp.lt.s32.totalorder %v3279_v28, 3 }
 0x150   : > { %v1725_v59 = vxor.u32 2147483648, %v1724_v10  ;;  %v2305_v16 = vadd.s32 4294967294, %v1503_v25  ;;  %v2081_v5 = vor.u32 %v2080_v18, %v2079_v9  ;;  %v2090_v2 = vsel %vm2088_vm6, %v2078_v23, 2102212464 }
 0x151   : > { %v2084_v11 = vor.u32 %v2083_v1, %v2082_v40  ;;  %v2089_v36 = vsel %vm2085_vm4, %v2069_v19, %v2072_v51  ;;  %v2091_v35 = vsel %vm2087_vm7, %v2075_v7, %v2090_v2  ;;  %v2093_v30 = vsel %vm2085_vm4, %v2072_v51, %v2075_v7 }
 0x152   : > { %v1726_v54 = vsel %vm1643_vm12, %v1725_v59, %v1724_v10  ;;  %vm2306_vm8 = vcmp.lt.s32.totalorder %v2305_v16, 0  ;;  %v2094_v22 = vsel %vm2088_vm6, %v2081_v5, 920167782  ;;  %vm2086_vm9 = vcmp.lt.s32.totalorder %v3279_v28, 2  ;;  %v3351_v28 = vpop.permute.xlu1 %341 }
 0x153   : > { %v1729_v32 = vsel %vm3262_vm2, %v2929_v15, %v1726_v54  ;;  %v1506_v27 = vsel %vm2306_vm8, 0, %v2305_v16  ;;  %v2095_v44 = vsel %vm2087_vm7, %v2078_v23, %v2094_v22  ;;  %v2097_v51 = vsel %vm2085_vm4, %v2075_v7, %v2078_v23 }
 0x154   : > { %2436 = vcosq.f32 %v1729_v32  ;;  %v1507_v10 = vsub.s32 32, %v1506_v27  ;;  %v1511_v25 = vsub.s32 4294967266, %v1506_v27  ;;  %v2092_v19 = vsel %vm2086_vm9, %v2089_v36, %v2091_v35 }
 0x155   : > { %2438 = vsinq.f32 %v1729_v32  ;;  %v2096_v9 = vsel %vm2086_vm9, %v2093_v30, %v2095_v44  ;;  %v2098_v18 = vsel %vm2088_vm6, %v2084_v11, 1326507024  ;;  %v1851_v59 = vshrl.u32 %v1850_v20, 23  ;;  %v3344_v20 = vpop.permute.xlu0 %327 }
 0x156   : > { %v1508_v40 = vshll.u32 %v3277_v56, %v1506_v27  ;;  %v1509_v1 = vshrl.u32 %v1491_v29, %v1507_v10  ;;  %v1512_v16 = vadd.s32 127, %v1511_v25  ;;  %v2099_v2 = vsel %vm2087_vm7, %v2081_v5, %v2098_v18 }
 0x157   : > { %v2100_v54 = vsel %vm2086_vm9, %v2097_v51, %v2099_v2  ;;  %v3336_v32 = vmul.u32.u64.low %v3282_v0, %v2096_v9  ;;  %v3337_v22 = vmul.u32.u64.high %v3282_v0, %v2096_v9, %v3336_v32  ;;  %v2319_v7 = vadd.s32 4294967169, %v1851_v59  ;;  %v3376_v2 = vpop.permute.xlu1 %345 }
 0x158   : > { %v1510_v23 = vor.u32 %v1509_v1, %v1508_v40  ;;  %v1513_v36 = vshll.u32 %v1512_v16, 23  ;;  %v3341_v35 = vmul.u32.u64.low %v3282_v0, %v2100_v54  ;;  %v3342_v11 = vmul.u32.u64.high %v3282_v0, %v2100_v54, %v3341_v35 }
 0x159   : > { %v1734_v29 = vand.u32 3, %v1730_v17  ;;  %vm1437_vm10 = vcmp.lt.s32.totalorder %v3052_v21, 0  ;;  %v1857_v56 = vadd.s32 1, %v2319_v7  ;;  %vm1733_vm11 = vweird.f32 %v2929_v15  ;;  %v3372_v18 = vpop.permute.xlu0 %339 }
 0x15a   : > { %vm3356_vm12 = vcmp.le.f32.partialorder %v1435_v42, 0.7853982  ;;  %v1514_v30 = vor.u32 4788187, %v1513_v36  ;;  %v1522_v43 = vsel %vm1437_vm10, %v1521_v53, %v3252_v12  ;;  %v2108_v58 = vmul.u32 %v3282_v0, %v2092_v19 }
 0x15b   : > { %v2111_v17 = vadd.s32 1, %v3337_v22  ;;  %v1854_v27 = vand.u32 8388607, %v1847_v49  ;;  %vm1858_vm13 = vcmp.gt.s32.totalorder %v1857_v56, 0  ;;  %v1517_v42 = vcvt.s32.f32 %v1510_v23 }
 0x15c   : > { %v1515_v44 = vand.u32 2147483647, %v1514_v30  ;;  %vm2110_vm14 = vc.u32 %v3342_v11, %v3336_v32  ;;  %v1859_v10 = vsel %vm1858_vm13, %v1857_v56, 0  ;;  %vm1735_vm15 = vcmp.lt.s32.totalorder %v1734_v29, 2 }
 0x15d   : > { %vm1736_vm3 = vcmp.eq.s32.totalorder %v1734_v29, 0  ;;  %v2112_v51 = vsel %vm2110_vm14, %v2111_v17, %v3337_v22  ;;  %v1861_v12 = vand.u32 31, %v1859_v10  ;;  %vm1739_vm0 = vcmp.eq.s32.totalorder %v1734_v29, 2 }
 0x15e   : > { %v2437_v25 = vpop.eup %2436  ;;  %v1518_v19 = vmul.f32 %v1517_v42, %v1515_v44  ;;  %v2113_v9 = vadd.s32 %v2112_v51, %v2108_v58  ;;  %v1524_v40 = vsel %vm3356_vm12, 0, %v1522_v43  ;;  %v1855_v1 = vor.u32 8388608, %v1854_v27 }
 0x15f   : > { %v2439_v53 = vpop.eup %2438  ;;  %v1740_v0 = vxor.u32 2147483648, %v2437_v25  ;;  %v1862_v16 = vsub.s32 32, %v1861_v12  ;;  %v3378_v22 = vshrl.u32 %v1859_v10, 5  ;;  %v1864_v35 = vshll.u32 %v2501_v41, %v1861_v12 }
 0x160   : > { %v1737_v59 = vxor.u32 2147483648, %v2439_v53  ;;  %v1519_v7 = vxor.u32 2147483648, %v1518_v19  ;;  %v2114_v23 = vadd.s32 536870912, %v2113_v9  ;;  %v1867_v10 = vshll.u32 %v4333_v50, %v1861_v12 }
 0x161   : > { %v1741_v54 = vsel %vm1739_vm0, %v1740_v0, %v2439_v53  ;;  %v1865_v56 = vshrl.u32 %v4333_v50, %v1862_v16  ;;  %v1868_v30 = vshrl.u32 %v4335_v52, %v1862_v16  ;;  %v1871_v27 = vshrl.u32 %v2504_v55, %v1862_v16  ;;  %v3401_v0 = vpop.permute.xlu0 %343 }
 0x162   : > { %v1738_v36 = vsel %vm1736_vm3, %v2437_v25, %v1737_v59  ;;  %v1520_v58 = vsel %vm1437_vm10, %v1519_v7, %v1518_v19  ;;  %v3387_v17 = vshrl.u32 %v2114_v23, 30  ;;  %v1870_v25 = vshll.u32 %v4335_v52, %v1861_v12  ;;  %v3407_v59 = vpop.permute.xlu1 %349 }
 0x163   : > { %v1742_v43 = vsel %vm1735_vm15, %v1738_v36, %v1741_v54  ;;  %v1523_v42 = vsel %vm3356_vm12, %v3052_v21, %v1520_v58  ;;  %v1866_v53 = vor.u32 %v1865_v56, %v1864_v35  ;;  %v1869_v15 = vor.u32 %v1868_v30, %v1867_v10 }
 0x164   : > { %v1743_v44 = vsel %vm1733_vm11, nan, %v1742_v43  ;;  %2440 = vcosq.f32 %v1523_v42  ;;  %v2116_v51 = vshll.u32 %v3387_v17, 30  ;;  %v1873_v5 = vshll.u32 %v2504_v55, %v1861_v12 }
 0x165   : > { %v2178_v29 = vsel %vm2956_vm1, %v2805_v14, %v1743_v44  ;;  %2442 = vsinq.f32 %v1523_v42  ;;  %v1874_v19 = vshrl.u32 %v2505_v57, %v1862_v16  ;;  %v1872_v7 = vor.u32 %v1871_v27, %v1870_v25  ;;  %v3425_v42 = vpop.permute.xlu0 %347 }
 0x166   : > { %2194 = vst.msk [vmem:[%s3007_s12 + $0x58] sm:$0xff] %vm423_vm5, %v2178_v29  ;;  %v3409_v54 = vsub.s32 %v2113_v9, %v2116_v51  ;;  %v1876_v23 = vshll.u32 %v2505_v57, %v1861_v12  ;;  %v1877_v36 = vshrl.u32 %v2506_v4, %v1862_v16  ;;  %v425_v30 = vsel %vm423_vm5, %v2672_v61, %v3245_v33 }
 0x167   : > { %v1875_v35 = vor.u32 %v1874_v19, %v1873_v5  ;;  %v1528_v58 = vand.u32 3, %v1524_v40  ;;  %vm1879_vm2 = vcmp.lt.s32.totalorder %v3378_v22, 1  ;;  %vm1881_vm4 = vcmp.lt.s32.totalorder %v3378_v22, 3 }
 0x168   : > { %v2119_v56 = vsub.s32 0, %v3409_v54  ;;  %v1878_v43 = vor.u32 %v1877_v36, %v1876_v23  ;;  %v1895_v9 = vshll.u32 %v1855_v1, 8  ;;  %vm1882_vm6 = vcmp.lt.s32.totalorder %v3378_v22, 4  ;;  %v3429_v1 = vpop.permute.xlu1 %353 }
 0x169   : > { %v1887_v12 = vsel %vm1879_vm2, %v1866_v53, %v1869_v15  ;;  %v1891_v44 = vsel %vm1879_vm2, %v1869_v15, %v1872_v7  ;;  %vm1527_vm7 = vweird.f32 %v3052_v21  ;;  %v1863_v61 = vshrl.u32 %v2501_v41, %v1862_v16 }
 0x16a   : > { %v2328_v27 = vmin.u32 %v2119_v56, %v3409_v54  ;;  %v1884_v33 = vsel %vm1882_vm6, %v1872_v7, 2102212464  ;;  %v1888_v40 = vsel %vm1882_vm6, %v1875_v35, 920167782  ;;  %v1892_v10 = vsel %vm1882_vm6, %v1878_v43, 1326507024 }
 0x16b   : > { %vm1880_vm8 = vcmp.lt.s32.totalorder %v3378_v22, 2  ;;  %v1889_v29 = vsel %vm1881_vm4, %v1872_v7, %v1888_v40  ;;  %v1893_v51 = vsel %vm1881_vm4, %v1875_v35, %v1892_v10  ;;  %v1883_v5 = vsel %vm1879_vm2, %v1863_v61, %v1866_v53 }
 0x16c   : > { %v2121_v25 = vclz %v2328_v27  ;;  %v1885_v16 = vsel %vm1881_vm4, %v1869_v15, %v1884_v33  ;;  %v1890_v19 = vsel %vm1880_vm8, %v1887_v12, %v1889_v29  ;;  %v1894_v23 = vsel %vm1880_vm8, %v1891_v44, %v1893_v51  ;;  %v3453_v12 = vpop.permute.xlu0 %351 }
 0x16d   : > { %vm1529_vm9 = vcmp.lt.s32.totalorder %v1528_v58, 2  ;;  %v3444_v43 = vmul.u32.u64.low %v1895_v9, %v1894_v23  ;;  %v3445_v7 = vmul.u32.u64.high %v1895_v9, %v1894_v23, %v3444_v43  ;;  %vm432_vm10 = vcmask 785408  }
 0x16e   : > { %v2441_v36 = vpop.eup %2440  ;;  %v2329_v56 = vadd.s32 4294967294, %v2121_v25  ;;  %v3447_v40 = vmul.u32.u64.low %v1895_v9, %v1890_v19  ;;  %v3448_v10 = vmul.u32.u64.high %v1895_v9, %v1890_v19, %v3447_v40  ;;  %vm1533_vm11 = vcmp.eq.s32.totalorder %v1528_v58, 2  ;;  %v366_v25 = vpop.permute.xlu1 %365 }
 0x16f   : > { %v2443_v27 = vpop.eup %2442  ;;  %v1534_v35 = vxor.u32 2147483648, %v2441_v36  ;;  %v1886_v15 = vsel %vm1880_vm8, %v1883_v5, %v1885_v16  ;;  %vm1530_vm13 = vcmp.eq.s32.totalorder %v1528_v58, 0  ;;  %v2109_v61 = vadd.s32 %v3336_v32, %v3342_v11 }
 0x170   : > { %v1531_v53 = vxor.u32 2147483648, %v2443_v27  ;;  %vm2330_vm12 = vcmp.lt.s32.totalorder %v2329_v56, 0  ;;  %v434_v23 = vsel %vm432_vm10, %v425_v30, %v3351_v28  ;;  %v1902_v22 = vmul.u32 %v1895_v9, %v1886_v15  ;;  %v2485_v15 = vld [vmem:[%s4328_s2] sm:$0x3] }
 0x171   : > { %v1535_v44 = vsel %vm1533_vm11, %v1534_v35, %v2443_v27  ;;  %v2124_v33 = vsel %vm2330_vm12, 0, %v2329_v56  ;;  %vm1904_vm14 = vc.u32 %v3445_v7, %v3447_v40  ;;  %v1905_v5 = vadd.s32 1, %v3448_v10 }
 0x172   : > { %v1532_v29 = vsel %vm1530_vm13, %v2441_v36, %v1531_v53  ;;  %v2125_v51 = vsub.s32 32, %v2124_v33  ;;  %v2129_v19 = vsub.s32 4294967266, %v2124_v33  ;;  %v2126_v11 = vshll.u32 %v3409_v54, %v2124_v33  ;;  %v364_v54 = vpop.permute.xlu0 %363 }
 0x173   : > { %v1536_v43 = vsel %vm1529_vm9, %v1532_v29, %v1535_v44  ;;  %v1906_v28 = vsel %vm1904_vm14, %v1905_v5, %v3448_v10  ;;  %vm441_vm15 = vcmask 916480   ;;  %v3471_v30 = vsub.s32 0, %v2634_v39  ;;  %v2484_v39 = vld [vmem:[%s4327_s1] sm:$0x3] }
 0x174   : > { %v1537_v32 = vsel %vm1527_vm7, nan, %v1536_v43  ;;  %v2127_v16 = vshrl.u32 %v2109_v61, %v2125_v51  ;;  %v2130_v36 = vadd.s32 127, %v2129_v19  ;;  %v1907_v21 = vadd.s32 %v1906_v28, %v1902_v22  ;;  %v370_v61 = vpop.permute.xlu1 %369 }
 0x175   : > { %v2176_v56 = vsel %vm2956_vm1, %v2933_v63, %v1537_v32  ;;  %v3476_v27 = vsel %vm441_vm15, %v434_v23, %v366_v25  ;;  %v424_v35 = vsel %vm423_vm5, %v2675_v62, %v3267_v3  ;;  %v427_v10 = vsel %vm423_vm5, %v2692_v8, %v3274_v6 }
 0x176   : > { %2192 = vst.msk [vmem:[%s3007_s12 + $0x48] sm:$0xff] %vm423_vm5, %v2176_v56  ;;  %v2128_v58 = vor.u32 %v2127_v16, %v2126_v11  ;;  %v2131_v9 = vshll.u32 %v2130_v36, 23  ;;  %v3488_v53 = vrot.slane %v2484_v39, %v3471_v30  ;;  %v3494_v44 = vrot.slane %v2485_v15, %v3471_v30 }
 0x177   : > { %v2139_v3 = vsub.s32 4, %v3387_v17  ;;  %v1908_v33 = vadd.s32 536870912, %v1907_v21  ;;  %v433_v8 = vsel %vm432_vm10, %v424_v35, %v3372_v18  ;;  %v436_v6 = vsel %vm432_vm10, %v427_v10, %v3376_v2 }
 0x178   : > { %v2132_v62 = vor.u32 4788187, %v2131_v9  ;;  %v464_v25 = vmul.f32 %v3488_v53, %v3476_v27  ;;  %v3504_v29 = vsel %vm441_vm15, %v433_v8, %v364_v54  ;;  %v2135_v19 = vcvt.s32.f32 %v2128_v58 }
 0x179   : > { %v1909_v23 = vshrl.u32 %v1908_v33, 30  ;;  %v3507_v43 = vsel %vm441_vm15, %v436_v6, %v370_v61  ;;  %vm2055_vm3 = vcmp.lt.s32.totalorder %v3202_v46, 0  ;;  %v462_v32 = vmul.f32 %v3488_v53, %v3504_v29 }
 0x17a   : > { %v2133_v51 = vand.u32 2147483647, %v2132_v62  ;;  %v3511_v22 = vadd.f32 %v3494_v44, %v464_v25  ;;  %v2140_v2 = vsel %vm2055_vm3, %v2139_v3, %v3387_v17  ;;  %v468_v36 = vmul.f32 %v3488_v53, %v3507_v43 }
 0x17b   : > { %v1910_v5 = vshll.u32 %v1909_v23, 30  ;;  %vm3524_vm0 = vcmp.le.f32.partialorder %v2053_v47, 0.7853982  ;;  %vm1849_vm2 = vcmp.lt.s32.totalorder %v3249_v45, 0  ;;  %v1933_v10 = vsub.s32 4, %v1909_v23 }
 0x17c   : > { %v2136_v18 = vmul.f32 %v2135_v19, %v2133_v51  ;;  %v4332_v11 = vand.u32 2147483647, %v3511_v22  ;;  %v717_v16 = vand.u32 2139095040, %v3511_v22  ;;  %v2142_v17 = vsel %vm3524_vm0, 0, %v2140_v2 }
 0x17d   : > { %v3528_v58 = vsub.s32 %v1907_v21, %v1910_v5  ;;  %v3539_v39 = vadd.f32 %v3494_v44, %v462_v32  ;;  %vm3546_vm4 = vcmp.le.f32.partialorder %v1847_v49, 0.7853982  ;;  %v3551_v62 = vadd.f32 %v3494_v44, %v468_v36  ;;  %v368_v5 = vpop.permute.xlu0 %367 }
 0x17e   : > { %v2137_v28 = vxor.u32 2147483648, %v2136_v18  ;;  %v718_v9 = vshrl.u32 %v717_v16, 23  ;;  %v721_v54 = vand.u32 8388607, %v4332_v11  ;;  %v3553_v3 = vand.u32 3, %v2142_v17 }
 0x17f   : > { %v1913_v47 = vsub.s32 0, %v3528_v58  ;;  %v426_v8 = vsel %vm423_vm5, %v2709_v24, %v3295_v34  ;;  %v429_v49 = vsel %vm423_vm5, %v2805_v14, %v3297_v31  ;;  %v3564_v19 = vsel %vm1849_vm2, %v1933_v10, %v1909_v23 }
 0x180   : > { %v2138_v35 = vsel %vm2055_vm3, %v2137_v28, %v2136_v18  ;;  %v2275_v61 = vadd.s32 4294967169, %v718_v9  ;;  %v722_v6 = vor.u32 8388608, %v721_v54  ;;  %v4331_v18 = vand.u32 2147483647, %v3539_v39 }
 0x181   : > { %v2141_v21 = vsel %vm3524_vm0, %v3202_v46, %v2138_v35  ;;  %v2320_v33 = vmin.u32 %v1913_v47, %v3528_v58  ;;  %v511_v2 = vand.u32 2139095040, %v3539_v39  ;;  %v435_v24 = vsel %vm432_vm10, %v426_v8, %v3401_v0 }
 0x182   : > { %2444 = vcosq.f32 %v2141_v21  ;;  %v724_v25 = vadd.s32 1, %v2275_v61  ;;  %v3572_v34 = vsel %vm432_vm10, %v429_v49, %v3407_v59  ;;  %v1129_v14 = vand.u32 2139095040, %v3551_v62 }
 0x183   : > { %2446 = vsinq.f32 %v2141_v21  ;;  %v1915_v51 = vclz %v2320_v33  ;;  %vm2151_vm7 = vcmp.eq.s32.totalorder %v3553_v3, 2  ;;  %v1903_v31 = vadd.s32 %v3447_v40, %v3445_v7 }
 0x184   : > { %vm725_vm6 = vcmp.gt.s32.totalorder %v724_v25, 0  ;;  %v512_v16 = vshrl.u32 %v511_v2, 23  ;;  %vm2148_vm8 = vcmp.eq.s32.totalorder %v3553_v3, 0  ;;  %v3582_v59 = vshll.u32 %v722_v6, 8 }
 0x185   : > { %v2321_v23 = vadd.s32 4294967294, %v1915_v51  ;;  %v726_v32 = vsel %vm725_vm6, %v724_v25, 0  ;;  %v3585_v56 = vsel %vm441_vm15, %v435_v24, %v368_v5  ;;  %vm2147_vm9 = vcmp.lt.s32.totalorder %v3553_v3, 2 }
 0x186   : > { %v728_v36 = vand.u32 31, %v726_v32  ;;  %v3588_v28 = vshrl.u32 %v726_v32, 5  ;;  %v3592_v7 = vand.u32 8388607, %v4331_v18  ;;  %v3594_v40 = vshrl.u32 %v1129_v14, 23 }
 0x187   : > { %vm2322_vm11 = vcmp.lt.s32.totalorder %v2321_v23, 0  ;;  %vm2145_vm12 = vweird.f32 %v3202_v46  ;;  %v2267_v35 = vadd.s32 4294967169, %v512_v16 }
 0x188   : > { %v1918_v17 = vsel %vm2322_vm11, 0, %v2321_v23  ;;  %v729_v9 = vsub.s32 32, %v728_v36  ;;  %v731_v54 = vshll.u32 %v2501_v41, %v728_v36  ;;  %v734_v61 = vshll.u32 %v4333_v50, %v728_v36 }
 0x189   : > { %v1919_v47 = vsub.s32 32, %v1918_v17  ;;  %v1920_v10 = vshll.u32 %v3528_v58, %v1918_v17  ;;  %v1923_v21 = vsub.s32 4294967266, %v1918_v17  ;;  %v737_v49 = vshll.u32 %v4335_v52, %v728_v36 }
 0x18a   : > { %v732_v33 = vshrl.u32 %v4333_v50, %v729_v9  ;;  %v735_v8 = vshrl.u32 %v4335_v52, %v729_v9  ;;  %v738_v6 = vshrl.u32 %v2504_v55, %v729_v9  ;;  %v730_v5 = vshrl.u32 %v2501_v41, %v729_v9 }
 0x18b   : > { %v1921_v51 = vshrl.u32 %v1903_v31, %v1919_v47  ;;  %v1924_v2 = vadd.s32 127, %v1923_v21  ;;  %v741_v24 = vshrl.u32 %v2505_v57, %v729_v9  ;;  %v740_v16 = vshll.u32 %v2504_v55, %v728_v36 }
 0x18c   : > { %v2445_v25 = vpop.eup %2444  ;;  %v733_v23 = vor.u32 %v732_v33, %v731_v54  ;;  %v736_v32 = vor.u32 %v735_v8, %v734_v61  ;;  %v739_v50 = vor.u32 %v738_v6, %v737_v49  ;;  %v743_v31 = vshll.u32 %v2505_v57, %v728_v36 }
 0x18d   : > { %v2447_v14 = vpop.eup %2446  ;;  %v2152_v58 = vxor.u32 2147483648, %v2445_v25  ;;  %v1922_v18 = vor.u32 %v1921_v51, %v1920_v10  ;;  %v1925_v11 = vshll.u32 %v1924_v2, 23  ;;  %v742_v0 = vor.u32 %v741_v24, %v740_v16 }
 0x18e   : > { %v2149_v17 = vxor.u32 2147483648, %v2447_v14  ;;  %v744_v47 = vshrl.u32 %v2506_v4, %v729_v9  ;;  %vm746_vm13 = vcmp.lt.s32.totalorder %v3588_v28, 1  ;;  %vm747_vm14 = vcmp.lt.s32.totalorder %v3588_v28, 2 }
 0x18f   : > { %v2153_v52 = vsel %vm2151_vm7, %v2152_v58, %v2447_v14  ;;  %v1926_v54 = vor.u32 4788187, %v1925_v11  ;;  %v1929_v61 = vcvt.s32.f32 %v1922_v18  ;;  %vm749_vm3 = vcmp.lt.s32.totalorder %v3588_v28, 4 }
 0x190   : > { %v2150_v21 = vsel %vm2148_vm8, %v2445_v25, %v2149_v17  ;;  %v745_v33 = vor.u32 %v744_v47, %v743_v31  ;;  %vm748_vm0 = vcmp.lt.s32.totalorder %v3588_v28, 3  ;;  %v751_v8 = vsel %vm749_vm3, %v739_v50, 2102212464 }
 0x191   : > { %v2154_v10 = vsel %vm2147_vm9, %v2150_v21, %v2153_v52  ;;  %v1927_v9 = vand.u32 2147483647, %v1926_v54  ;;  %v750_v3 = vsel %vm746_vm13, %v730_v5, %v733_v23  ;;  %v754_v52 = vsel %vm746_vm13, %v733_v23, %v736_v32 }
 0x192   : > { %v2155_v36 = vsel %vm2145_vm12, nan, %v2154_v10  ;;  %v755_v18 = vsel %vm749_vm3, %v742_v0, 920167782  ;;  %v752_v46 = vsel %vm748_vm0, %v736_v32, %v751_v8  ;;  %v758_v25 = vsel %vm746_vm13, %v736_v32, %v739_v50 }
 0x193   : > { %v2182_v11 = vsel %vm2956_vm1, %v3080_v37, %v2155_v36  ;;  %v1930_v49 = vmul.f32 %v1929_v61, %v1927_v9  ;;  %v756_v6 = vsel %vm748_vm0, %v739_v50, %v755_v18  ;;  %v759_v2 = vsel %vm749_vm3, %v745_v33, 1326507024 }
 0x194   : > { %2198 = vst.msk [vmem:[%s3007_s12 + $0x78] sm:$0xff] %vm423_vm5, %v2182_v11  ;;  %v757_v51 = vsel %vm747_vm14, %v754_v52, %v756_v6  ;;  %v516_v5 = vor.u32 8388608, %v3592_v7  ;;  %v518_v24 = vadd.s32 1, %v2267_v35  ;;  %v760_v58 = vsel %vm748_vm0, %v742_v0, %v759_v2 }
 0x195   : > { %v1931_v14 = vxor.u32 2147483648, %v1930_v49  ;;  %v3642_v23 = vmul.u32.u64.low %v3582_v59, %v757_v51  ;;  %v3643_v16 = vmul.u32.u64.high %v3582_v59, %v757_v51, %v3642_v23  ;;  %v753_v17 = vsel %vm747_vm14, %v750_v3, %v752_v46 }
 0x196   : > { %v761_v50 = vsel %vm747_vm14, %v758_v25, %v760_v58  ;;  %vm519_vm6 = vcmp.gt.s32.totalorder %v518_v24, 0  ;;  %v2291_v32 = vadd.s32 4294967169, %v3594_v40  ;;  %v4356_v28 = vsel %vm3546_vm4, 0, %v3564_v19 }
 0x197   : > { %v1932_v7 = vsel %vm1849_vm2, %v1931_v14, %v1930_v49  ;;  %v3654_v35 = vmul.u32.u64.low %v3582_v59, %v761_v50  ;;  %v3655_v0 = vmul.u32.u64.high %v3582_v59, %v761_v50, %v3654_v35  ;;  %v520_v31 = vsel %vm519_vm6, %v518_v24, 0 }
 0x198   : > { %v1935_v47 = vsel %vm3546_vm4, %v3249_v45, %v1932_v7  ;;  %v3664_v21 = vand.u32 3, %v4356_v28  ;;  %v522_v54 = vand.u32 31, %v520_v31  ;;  %v3668_v40 = vmul.f32 %v3488_v53, %v3585_v56 }
 0x199   : > { %2448 = vcosq.f32 %v1935_v47  ;;  %v772_v61 = vadd.s32 1, %v3643_v16  ;;  %v3671_v10 = vshll.u32 %v516_v5, 8  ;;  %v4337_v33 = vand.u32 2147483647, %v3551_v62 }
 0x19a   : > { %2450 = vsinq.f32 %v1935_v47  ;;  %v769_v36 = vmul.u32 %v3582_v59, %v753_v17  ;;  %v521_v15 = vshrl.u32 %v520_v31, 5  ;;  %v523_v9 = vsub.s32 32, %v522_v54 }
 0x19b   : > { %vm771_vm2 = vc.u32 %v3655_v0, %v3642_v23  ;;  %v525_v19 = vshll.u32 %v2501_v41, %v522_v54  ;;  %v4357_v8 = vmov 2475754826   ;;  %v3679_v3 = vadd.s32 1, %v2291_v32 }
 0x19c   : > { %v528_v11 = vshll.u32 %v4357_v8, %v522_v54  ;;  %v773_v52 = vsel %vm771_vm2, %v772_v61, %v3643_v16  ;;  %v526_v18 = vshrl.u32 %v4357_v8, %v523_v9  ;;  %v4358_v49 = vmov 2131351028  }
 0x19d   : > { %v529_v46 = vshrl.u32 %v4358_v49, %v523_v9  ;;  %v531_v6 = vshll.u32 %v4358_v49, %v522_v54  ;;  %v774_v59 = vadd.s32 %v773_v52, %v769_v36  ;;  %v532_v25 = vshrl.u32 %v2504_v55, %v523_v9 }
 0x19e   : > { %v534_v51 = vshll.u32 %v2504_v55, %v522_v54  ;;  %v535_v2 = vshrl.u32 %v2505_v57, %v523_v9  ;;  %vm1942_vm4 = vcmp.eq.s32.totalorder %v3664_v21, 0  ;;  %v527_v5 = vor.u32 %v526_v18, %v525_v19 }
 0x19f   : > { %v530_v24 = vor.u32 %v529_v46, %v528_v11  ;;  %v537_v14 = vshll.u32 %v2505_v57, %v522_v54  ;;  %v538_v58 = vshrl.u32 %v2506_v4, %v523_v9  ;;  %v775_v16 = vadd.s32 536870912, %v774_v59 }
 0x1a0   : > { %v524_v17 = vshrl.u32 %v2501_v41, %v523_v9  ;;  %v533_v50 = vor.u32 %v532_v25, %v531_v6  ;;  %v536_v32 = vor.u32 %v535_v2, %v534_v51  ;;  %vm1939_vm7 = vweird.f32 %v3249_v45 }
 0x1a1   : > { %v539_v7 = vor.u32 %v538_v58, %v537_v14  ;;  %vm540_vm8 = vcmp.lt.s32.totalorder %v521_v15, 1  ;;  %vm542_vm9 = vcmp.lt.s32.totalorder %v521_v15, 3  ;;  %vm543_vm11 = vcmp.lt.s32.totalorder %v521_v15, 4 }
 0x1a2   : > { %v776_v35 = vshrl.u32 %v775_v16, 30  ;;  %v545_v31 = vsel %vm543_vm11, %v533_v50, 2102212464  ;;  %v548_v47 = vsel %vm540_vm8, %v527_v5, %v530_v24  ;;  %v549_v28 = vsel %vm543_vm11, %v536_v32, 920167782 }
 0x1a3   : > { %vm541_vm12 = vcmp.lt.s32.totalorder %v521_v15, 2  ;;  %v550_v54 = vsel %vm542_vm9, %v533_v50, %v549_v28  ;;  %v552_v61 = vsel %vm540_vm8, %v530_v24, %v533_v50  ;;  %v553_v36 = vsel %vm543_vm11, %v539_v7, 1326507024  ;;  %v2449_v19 = vpop.eup %2448 }
 0x1a4   : > { %v777_v11 = vshll.u32 %v776_v35, 30  ;;  %v544_v9 = vsel %vm540_vm8, %v524_v17, %v527_v5  ;;  %v546_v52 = vsel %vm542_vm9, %v530_v24, %v545_v31  ;;  %v551_v18 = vsel %vm541_vm12, %v548_v47, %v550_v54  ;;  %v2451_v46 = vpop.eup %2450 }
 0x1a5   : > { %v1946_v6 = vxor.u32 2147483648, %v2449_v19  ;;  %v554_v25 = vsel %vm542_vm9, %v536_v32, %v553_v36  ;;  %v3698_v51 = vmul.u32.u64.low %v3671_v10, %v551_v18  ;;  %v3699_v2 = vmul.u32.u64.high %v3671_v10, %v551_v18, %v3698_v51  ;;  %v374_v32 = vpop.permute.xlu1 %373 }
 0x1a6   : > { %v1943_v14 = vxor.u32 2147483648, %v2451_v46  ;;  %vm1945_vm13 = vcmp.eq.s32.totalorder %v3664_v21, 2  ;;  %v3703_v58 = vsub.s32 %v774_v59, %v777_v11  ;;  %v555_v5 = vsel %vm541_vm12, %v552_v61, %v554_v25 }
 0x1a7   : > { %v1947_v16 = vsel %vm1945_vm13, %v1946_v6, %v2451_v46  ;;  %v3707_v24 = vmul.u32.u64.low %v3671_v10, %v555_v5  ;;  %v3708_v17 = vmul.u32.u64.high %v3671_v10, %v555_v5, %v3707_v24  ;;  %v1133_v50 = vand.u32 8388607, %v4337_v33 }
 0x1a8   : > { %vm1941_vm14 = vcmp.lt.s32.totalorder %v3664_v21, 2  ;;  %v1944_v7 = vsel %vm1942_vm4, %v2449_v19, %v1943_v14  ;;  %v780_v59 = vsub.s32 0, %v3703_v58  ;;  %v547_v31 = vsel %vm541_vm12, %v544_v9, %v546_v52 }
 0x1a9   : > { %v1948_v47 = vsel %vm1941_vm14, %v1944_v7, %v1947_v16  ;;  %v800_v28 = vsub.s32 4, %v776_v35  ;;  %v566_v54 = vadd.s32 1, %v3699_v2  ;;  %vm1137_vm3 = vcmp.gt.s32.totalorder %v3679_v3, 0 }
 0x1aa   : > { %v1949_v61 = vsel %vm1939_vm7, nan, %v1948_v47  ;;  %vm716_vm0 = vcmp.lt.s32.totalorder %v3511_v22, 0  ;;  %v2276_v36 = vmin.u32 %v780_v59, %v3703_v58  ;;  %v3725_v21 = vsel %vm441_vm15, %v3572_v34, %v374_v32 }
 0x1ab   : > { %v2180_v15 = vsel %vm2956_vm1, %v3230_v38, %v1949_v61  ;;  %v563_v19 = vmul.u32 %v3671_v10, %v547_v31  ;;  %vm565_vm6 = vc.u32 %v3708_v17, %v3698_v51  ;;  %v1134_v11 = vor.u32 8388608, %v1133_v50 }
 0x1ac   : > { %2196 = vst.msk [vmem:[%s3007_s12 + $0x68] sm:$0xff] %vm423_vm5, %v2180_v15  ;;  %v782_v45 = vclz %v2276_v36  ;;  %v567_v9 = vsel %vm565_vm6, %v566_v54, %v3699_v2  ;;  %v1138_v52 = vsel %vm1137_vm3, %v3679_v3, 0  ;;  %v3739_v34 = vadd.f32 %v3494_v44, %v3668_v40 }
 0x1ad   : > { %v3743_v60 = vsel %vm716_vm0, %v800_v28, %v776_v35  ;;  %v568_v10 = vadd.s32 %v567_v9, %v563_v19  ;;  %v1140_v18 = vand.u32 31, %v1138_v52  ;;  %v3748_v46 = vsel %vm423_vm5, %v2933_v63, %v3321_v26 }
 0x1ae   : > { %v2277_v25 = vadd.s32 4294967294, %v782_v45  ;;  %v3754_v3 = vmul.f32 %v3488_v53, %v3725_v21  ;;  %v4359_v40 = vand.u32 2147483647, %v3511_v22  ;;  %v3762_v5 = vshll.u32 %v1134_v11, 8 }
 0x1af   : > { %v569_v2 = vadd.s32 536870912, %v568_v10  ;;  %v1141_v14 = vsub.s32 32, %v1140_v18  ;;  %v770_v63 = vadd.s32 %v3642_v23, %v3655_v0  ;;  %v3772_v32 = vshrl.u32 %v1138_v52, 5 }
 0x1b0   : > { %vm3758_vm1 = vcmp.le.f32.partialorder %v4359_v40, 0.7853982  ;;  %vm2278_vm2 = vcmp.lt.s32.totalorder %v2277_v25, 0  ;;  %v1143_v7 = vshll.u32 %v2501_v41, %v1140_v18  ;;  %v1146_v28 = vshll.u32 %v4357_v8, %v1140_v18 }
 0x1b1   : > { %v785_v24 = vsel %vm2278_vm2, 0, %v2277_v25  ;;  %v3770_v50 = vshrl.u32 %v569_v2, 30  ;;  %v1144_v47 = vshrl.u32 %v4357_v8, %v1141_v14  ;;  %v1147_v23 = vshrl.u32 %v4358_v49, %v1141_v14 }
 0x1b2   : > { %v786_v59 = vsub.s32 32, %v785_v24  ;;  %v790_v31 = vsub.s32 4294967266, %v785_v24  ;;  %v1149_v54 = vshll.u32 %v4358_v49, %v1140_v18  ;;  %v1150_v61 = vshrl.u32 %v2504_v55, %v1141_v14 }
 0x1b3   : > { %v571_v0 = vshll.u32 %v3770_v50, 30  ;;  %v787_v36 = vshll.u32 %v3703_v58, %v785_v24  ;;  %v1153_v11 = vshrl.u32 %v2505_v57, %v1141_v14  ;;  %v1152_v9 = vshll.u32 %v2504_v55, %v1140_v18 }
 0x1b4   : > { %v788_v15 = vshrl.u32 %v770_v63, %v786_v59  ;;  %v791_v19 = vadd.s32 127, %v790_v31  ;;  %v1155_v52 = vshll.u32 %v2505_v57, %v1140_v18  ;;  %v1156_v25 = vshrl.u32 %v2506_v4, %v1141_v14 }
 0x1b5   : > { %v3783_v45 = vsub.s32 %v568_v10, %v571_v0  ;;  %v1145_v33 = vor.u32 %v1144_v47, %v1143_v7  ;;  %v1148_v6 = vor.u32 %v1147_v23, %v1146_v28  ;;  %v1151_v16 = vor.u32 %v1150_v61, %v1149_v54 }
 0x1b6   : > { %v789_v40 = vor.u32 %v788_v15, %v787_v36  ;;  %v792_v2 = vshll.u32 %v791_v19, 23  ;;  %v1154_v58 = vor.u32 %v1153_v11, %v1152_v9  ;;  %v923_v63 = vand.u32 2139095040, %v3739_v34 }
 0x1b7   : > { %v574_v26 = vsub.s32 0, %v3783_v45  ;;  %v594_v10 = vsub.s32 4, %v3770_v50  ;;  %v1142_v59 = vshrl.u32 %v2501_v41, %v1141_v14  ;;  %v1157_v31 = vor.u32 %v1156_v25, %v1155_v52 }
 0x1b8   : > { %v793_v24 = vor.u32 4788187, %v792_v2  ;;  %v796_v0 = vcvt.s32.f32 %v789_v40  ;;  %vm510_vm4 = vcmp.lt.s32.totalorder %v3539_v39, 0  ;;  %vm1158_vm7 = vcmp.lt.s32.totalorder %v3772_v32, 1 }
 0x1b9   : > { %v2268_v18 = vmin.u32 %v574_v26, %v3783_v45  ;;  %vm1159_vm8 = vcmp.lt.s32.totalorder %v3772_v32, 2  ;;  %vm1160_vm9 = vcmp.lt.s32.totalorder %v3772_v32, 3  ;;  %vm1161_vm11 = vcmp.lt.s32.totalorder %v3772_v32, 4 }
 0x1ba   : > { %v794_v7 = vand.u32 2147483647, %v793_v24  ;;  %v1166_v47 = vsel %vm1158_vm7, %v1145_v33, %v1148_v6  ;;  %v1163_v28 = vsel %vm1161_vm11, %v1151_v16, 2102212464  ;;  %v1167_v54 = vsel %vm1161_vm11, %v1154_v58, 920167782 }
 0x1bb   : > { %v576_v23 = vclz %v2268_v18  ;;  %v1170_v14 = vsel %vm1158_vm7, %v1148_v6, %v1151_v16  ;;  %v1162_v36 = vsel %vm1158_vm7, %v1142_v59, %v1145_v33  ;;  %v1168_v15 = vsel %vm1160_vm9, %v1151_v16, %v1167_v54 }
 0x1bc   : > { %v797_v61 = vmul.f32 %v796_v0, %v794_v7  ;;  %v1171_v19 = vsel %vm1161_vm11, %v1157_v31, 1326507024  ;;  %v1164_v26 = vsel %vm1160_vm9, %v1148_v6, %v1163_v28  ;;  %v1169_v9 = vsel %vm1159_vm8, %v1166_v47, %v1168_v15 }
 0x1bd   : > { %v2269_v11 = vadd.s32 4294967294, %v576_v23  ;;  %v1172_v52 = vsel %vm1160_vm9, %v1154_v58, %v1171_v19  ;;  %v3803_v2 = vmul.u32.u64.low %v3762_v5, %v1169_v9  ;;  %v3804_v24 = vmul.u32.u64.high %v3762_v5, %v1169_v9, %v3803_v2 }
 0x1be   : > { %v798_v25 = vxor.u32 2147483648, %v797_v61  ;;  %v1173_v40 = vsel %vm1159_vm8, %v1170_v14, %v1172_v52  ;;  %v564_v0 = vadd.s32 %v3698_v51, %v3708_v17  ;;  %v924_v59 = vshrl.u32 %v923_v63, 23 }
 0x1bf   : > { %vm2270_vm12 = vcmp.lt.s32.totalorder %v2269_v11, 0  ;;  %v3809_v33 = vmul.u32.u64.low %v3762_v5, %v1173_v40  ;;  %v3810_v16 = vmul.u32.u64.high %v3762_v5, %v1173_v40, %v3809_v33  ;;  %v4362_v31 = vand.u32 2147483647, %v3739_v34 }
 0x1c0   : > { %v799_v6 = vsel %vm716_vm0, %v798_v25, %v797_v61  ;;  %v579_v58 = vsel %vm2270_vm12, 0, %v2269_v11  ;;  %v1165_v51 = vsel %vm1159_vm8, %v1162_v36, %v1164_v26  ;;  %v595_v17 = vsel %vm510_vm4, %v594_v10, %v3770_v50 }
 0x1c1   : > { %v927_v18 = vand.u32 8388607, %v4362_v31  ;;  %v802_v7 = vsel %vm3758_vm1, %v3511_v22, %v799_v6  ;;  %v580_v47 = vsub.s32 32, %v579_v58  ;;  %v584_v23 = vsub.s32 4294967266, %v579_v58 }
 0x1c2   : > { %2452 = vcosq.f32 %v802_v7  ;;  %v1184_v28 = vadd.s32 1, %v3804_v24  ;;  %v2283_v63 = vadd.s32 4294967169, %v924_v59  ;;  %v581_v54 = vshll.u32 %v3783_v45, %v579_v58 }
 0x1c3   : > { %2454 = vsinq.f32 %v802_v7  ;;  %v582_v14 = vshrl.u32 %v564_v0, %v580_v47  ;;  %v585_v61 = vadd.s32 127, %v584_v23  ;;  %v4363_v15 = vand.u32 2147483647, %v3539_v39 }
 0x1c4   : > { %v1181_v32 = vmul.u32 %v3762_v5, %v1165_v51  ;;  %vm1183_vm14 = vc.u32 %v3810_v16, %v3803_v2  ;;  %v930_v36 = vadd.s32 1, %v2283_v63  ;;  %v4366_v50 = vsel %vm3758_vm1, 0, %v3743_v60 }
 0x1c5   : > { %vm3828_vm13 = vcmp.le.f32.partialorder %v4363_v15, 0.7853982  ;;  %v807_v10 = vand.u32 3, %v4366_v50  ;;  %v583_v11 = vor.u32 %v582_v14, %v581_v54  ;;  %v586_v45 = vshll.u32 %v585_v61, 23 }
 0x1c6   : > { %v1185_v26 = vsel %vm1183_vm14, %v1184_v28, %v3804_v24  ;;  %v3842_v9 = vsel %vm423_vm5, %v3080_v37, %v3326_v48  ;;  %v597_v5 = vsel %vm3828_vm13, 0, %v595_v17  ;;  %vm931_vm3 = vcmp.gt.s32.totalorder %v930_v36, 0 }
 0x1c7   : > { %v1186_v52 = vadd.s32 %v1185_v26, %v1181_v32  ;;  %v587_v25 = vor.u32 4788187, %v586_v45  ;;  %v928_v40 = vor.u32 8388608, %v927_v18  ;;  %v932_v35 = vsel %vm931_vm3, %v930_v36, 0 }
 0x1c8   : > { %v3848_v60 = vadd.f32 %v3494_v44, %v3754_v3  ;;  %v3853_v24 = vsel %vm432_vm10, %v3748_v46, %v3425_v42  ;;  %v4367_v37 = vrot.slane %v2811_v13, %v3471_v30  ;;  %v934_v33 = vand.u32 31, %v932_v35 }
 0x1c9   : > { %v1187_v0 = vadd.s32 536870912, %v1186_v52  ;;  %vm806_vm6 = vweird.f32 %v3511_v22  ;;  %vm808_vm1 = vcmp.lt.s32.totalorder %v807_v10, 2  ;;  %vm809_vm2 = vcmp.eq.s32.totalorder %v807_v10, 0 }
 0x1ca   : > { %vm3858_vm0 = vcmp.eq.s32.totalorder %v4367_v37, 1  ;;  %v588_v3 = vand.u32 2147483647, %v587_v25  ;;  %v590_v6 = vcvt.s32.f32 %v583_v11  ;;  %vm812_vm7 = vcmp.eq.s32.totalorder %v807_v10, 2 }
 0x1cb   : > { %v3863_v58 = vand.u32 3, %v597_v5  ;;  %v3865_v42 = vshrl.u32 %v1187_v0, 30  ;;  %v935_v46 = vsub.s32 32, %v934_v33  ;;  %v3868_v13 = vadd.s32 %v3803_v2, %v3810_v16 }
 0x1cc   : > { %v591_v59 = vmul.f32 %v590_v6, %v588_v3  ;;  %v3870_v30 = vshll.u32 %v928_v40, 8  ;;  %v1538_v31 = vand.u32 2147483647, %v3848_v60  ;;  %v2453_v18 = vpop.eup %2452  ;;  %v3874_v47 = vshrl.u32 %v932_v35, 5 }
 0x1cd   : > { %v1189_v7 = vshll.u32 %v3865_v42, 30  ;;  %v938_v23 = vshrl.u32 %v4357_v8, %v935_v46  ;;  %v1541_v51 = vand.u32 2139095040, %v3848_v60  ;;  %v2455_v17 = vpop.eup %2454  ;;  %v813_v28 = vxor.u32 2147483648, %v2453_v18 }
 0x1ce   : > { %v592_v63 = vxor.u32 2147483648, %v591_v59  ;;  %v937_v54 = vshll.u32 %v2501_v41, %v934_v33  ;;  %v941_v2 = vshrl.u32 %v4358_v49, %v935_v46  ;;  %v810_v16 = vxor.u32 2147483648, %v2455_v17 }
 0x1cf   : > { %v3880_v14 = vsub.s32 %v1186_v52, %v1189_v7  ;;  %v940_v61 = vshll.u32 %v4357_v8, %v934_v33  ;;  %v944_v15 = vshrl.u32 %v2504_v55, %v935_v46  ;;  %v814_v32 = vsel %vm812_vm7, %v813_v28, %v2455_v17 }
 0x1d0   : > { %v593_v36 = vsel %vm510_vm4, %v592_v63, %v591_v59  ;;  %v943_v50 = vshll.u32 %v4358_v49, %v934_v33  ;;  %v946_v11 = vshll.u32 %v2504_v55, %v934_v33  ;;  %v811_v45 = vsel %vm809_vm2, %v2453_v18, %v810_v16 }
 0x1d1   : > { %v596_v26 = vsel %vm3828_vm13, %v3539_v39, %v593_v36  ;;  %v1192_v5 = vsub.s32 0, %v3880_v14  ;;  %v939_v52 = vor.u32 %v938_v23, %v937_v54  ;;  %v815_v25 = vsel %vm808_vm1, %v811_v45, %v814_v32 }
 0x1d2   : > { %2456 = vcosq.f32 %v596_v26  ;;  %v942_v40 = vor.u32 %v941_v2, %v940_v61  ;;  %v947_v35 = vshrl.u32 %v2505_v57, %v935_v46  ;;  %v816_v37 = vsel %vm806_vm6, nan, %v815_v25 }
 0x1d3   : > { %2458 = vsinq.f32 %v596_v26  ;;  %v2292_v0 = vmin.u32 %v1192_v5, %v3880_v14  ;;  %v945_v3 = vor.u32 %v944_v15, %v943_v50  ;;  %v2169_v19 = vsel %vm3858_vm0, %v3476_v27, %v816_v37 }
 0x1d4   : > { %v948_v6 = vor.u32 %v947_v35, %v946_v11  ;;  %v949_v59 = vshll.u32 %v2505_v57, %v934_v33  ;;  %v1542_v10 = vshrl.u32 %v1541_v51, 23  ;;  %2185 = vst [vmem:[%s3007_s12 + $0x10] sm:$0xff] %v2169_v19  ;;  %v936_v7 = vshrl.u32 %v2501_v41, %v935_v46 }
 0x1d5   : > { %v1194_v18 = vclz %v2292_v0  ;;  %v950_v23 = vshrl.u32 %v2506_v4, %v935_v46  ;;  %vm952_vm4 = vcmp.lt.s32.totalorder %v3874_v47, 1  ;;  %vm953_vm8 = vcmp.lt.s32.totalorder %v3874_v47, 2 }
 0x1d6   : > { %vm954_vm9 = vcmp.lt.s32.totalorder %v3874_v47, 3  ;;  %vm955_vm11 = vcmp.lt.s32.totalorder %v3874_v47, 4  ;;  %v960_v22 = vsel %vm952_vm4, %v939_v52, %v942_v40  ;;  %vm603_vm12 = vcmp.eq.s32.totalorder %v3863_v58, 0 }
 0x1d7   : > { %v2293_v27 = vadd.s32 4294967294, %v1194_v18  ;;  %v951_v33 = vor.u32 %v950_v23, %v949_v59  ;;  %v957_v51 = vsel %vm955_vm11, %v945_v3, 2102212464  ;;  %v961_v17 = vsel %vm955_vm11, %v948_v6, 920167782 }
 0x1d8   : > { %vm602_vm13 = vcmp.lt.s32.totalorder %v3863_v58, 2  ;;  %vm1128_vm14 = vcmp.lt.s32.totalorder %v3551_v62, 0  ;;  %v956_v46 = vsel %vm952_vm4, %v936_v7, %v939_v52  ;;  %v958_v28 = vsel %vm954_vm9, %v942_v40, %v957_v51 }
 0x1d9   : > { %v962_v63 = vsel %vm954_vm9, %v945_v3, %v961_v17  ;;  %v964_v54 = vsel %vm952_vm4, %v942_v40, %v945_v3  ;;  %vm600_vm3 = vweird.f32 %v3539_v39  ;;  %vm2294_vm6 = vcmp.lt.s32.totalorder %v2293_v27, 0 }
 0x1da   : > { %v963_v2 = vsel %vm953_vm8, %v960_v22, %v962_v63  ;;  %v965_v16 = vsel %vm955_vm11, %v951_v33, 1326507024  ;;  %v2307_v61 = vadd.s32 4294967169, %v1542_v10  ;;  %v1197_v15 = vsel %vm2294_vm6, 0, %v2293_v27  ;;  %v372_v33 = vpop.permute.xlu0 %371 }
 0x1db   : > { %v966_v32 = vsel %vm954_vm9, %v948_v6, %v965_v16  ;;  %v3929_v36 = vmul.u32.u64.low %v3870_v30, %v963_v2  ;;  %v3930_v50 = vmul.u32.u64.high %v3870_v30, %v963_v2, %v3929_v36  ;;  %v1198_v11 = vsub.s32 32, %v1197_v15 }
 0x1dc   : > { %v1202_v45 = vsub.s32 4294967266, %v1197_v15  ;;  %v1212_v26 = vsub.s32 4, %v3865_v42  ;;  %v967_v5 = vsel %vm953_vm8, %v964_v54, %v966_v32  ;;  %v2457_v52 = vpop.eup %2456  ;;  %v1199_v25 = vshll.u32 %v3880_v14, %v1197_v15 }
 0x1dd   : > { %v959_v40 = vsel %vm953_vm8, %v956_v46, %v958_v28  ;;  %v3940_v35 = vmul.u32.u64.low %v3870_v30, %v967_v5  ;;  %v3941_v37 = vmul.u32.u64.high %v3870_v30, %v967_v5, %v3940_v35  ;;  %v2459_v0 = vpop.eup %2458  ;;  %v607_v3 = vxor.u32 2147483648, %v2457_v52 }
 0x1de   : > { %v1200_v19 = vshrl.u32 %v3868_v13, %v1198_v11  ;;  %v1203_v6 = vadd.s32 127, %v1202_v45  ;;  %v1548_v59 = vadd.s32 1, %v2307_v61  ;;  %v604_v10 = vxor.u32 2147483648, %v2459_v0 }
 0x1df   : > { %vm606_vm1 = vcmp.eq.s32.totalorder %v3863_v58, 2  ;;  %v978_v18 = vadd.s32 1, %v3930_v50  ;;  %v1545_v14 = vand.u32 8388607, %v1538_v31  ;;  %v975_v27 = vmul.u32 %v3870_v30, %v959_v40 }
 0x1e0   : > { %v608_v47 = vsel %vm606_vm1, %v607_v3, %v2459_v0  ;;  %v1201_v7 = vor.u32 %v1200_v19, %v1199_v25  ;;  %v1204_v23 = vshll.u32 %v1203_v6, 23  ;;  %vm1549_vm2 = vcmp.gt.s32.totalorder %v1548_v59, 0 }
 0x1e1   : > { %v605_v22 = vsel %vm603_vm12, %v2457_v52, %v604_v10  ;;  %vm977_vm7 = vc.u32 %v3941_v37, %v3929_v36  ;;  %v1550_v13 = vsel %vm1549_vm2, %v1548_v59, 0  ;;  %v1213_v46 = vsel %vm1128_vm14, %v1212_v26, %v3865_v42 }
 0x1e2   : > { %v609_v51 = vsel %vm602_vm13, %v605_v22, %v608_v47  ;;  %v1205_v17 = vor.u32 4788187, %v1204_v23  ;;  %v979_v28 = vsel %vm977_vm7, %v978_v18, %v3930_v50  ;;  %v4370_v30 = vand.u32 2147483647, %v3551_v62 }
 0x1e3   : > { %v610_v63 = vsel %vm600_vm3, nan, %v609_v51  ;;  %v980_v2 = vadd.s32 %v979_v28, %v975_v27  ;;  %v1552_v16 = vand.u32 31, %v1550_v13  ;;  %v1208_v15 = vcvt.s32.f32 %v1201_v7 }
 0x1e4   : > { %vm3963_vm4 = vcmp.le.f32.partialorder %v4370_v30, 0.7853982  ;;  %v2167_v58 = vsel %vm3858_vm0, %v3504_v29, %v610_v63  ;;  %v1206_v61 = vand.u32 2147483647, %v1205_v17  ;;  %v3972_v42 = vsel %vm441_vm15, %v3853_v24, %v372_v33 }
 0x1e5   : > { %2183 = vst [vmem:[%s3007_s12] sm:$0xff] %v2167_v58  ;;  %v1215_v39 = vsel %vm3963_vm4, 0, %v1213_v46  ;;  %v981_v32 = vadd.s32 536870912, %v980_v2  ;;  %v1546_v50 = vor.u32 8388608, %v1545_v14  ;;  %v1553_v11 = vsub.s32 32, %v1552_v16 }
 0x1e6   : > { %v1209_v45 = vmul.f32 %v1208_v15, %v1206_v61  ;;  %v1555_v26 = vshll.u32 %v2501_v41, %v1552_v16  ;;  %v1558_v5 = vshll.u32 %v4357_v8, %v1552_v16  ;;  %v1561_v29 = vshll.u32 %v4358_v49, %v1552_v16 }
 0x1e7   : > { %v3980_v52 = vshrl.u32 %v981_v32, 30  ;;  %v1556_v25 = vshrl.u32 %v4357_v8, %v1553_v11  ;;  %v1559_v24 = vshrl.u32 %v4358_v49, %v1553_v11  ;;  %v1564_v40 = vshll.u32 %v2504_v55, %v1552_v16 }
 0x1e8   : > { %v1210_v35 = vxor.u32 2147483648, %v1209_v45  ;;  %v1562_v0 = vshrl.u32 %v2504_v55, %v1553_v11  ;;  %v1565_v3 = vshrl.u32 %v2505_v57, %v1553_v11  ;;  %v1568_v19 = vshrl.u32 %v2506_v4, %v1553_v11 }
 0x1e9   : > { %v983_v6 = vshll.u32 %v3980_v52, 30  ;;  %v1551_v59 = vshrl.u32 %v1550_v13, 5  ;;  %v1557_v10 = vor.u32 %v1556_v25, %v1555_v26  ;;  %v1567_v18 = vshll.u32 %v2505_v57, %v1552_v16 }
 0x1ea   : > { %v1211_v14 = vsel %vm1128_vm14, %v1210_v35, %v1209_v45  ;;  %v1560_v47 = vor.u32 %v1559_v24, %v1558_v5  ;;  %v1563_v7 = vor.u32 %v1562_v0, %v1561_v29  ;;  %v1566_v23 = vor.u32 %v1565_v3, %v1564_v40  ;;  %v378_v29 = vpop.permute.xlu1 %377 }
 0x1eb   : > { %v440_v22 = vsel %vm432_vm10, %v3842_v9, %v3429_v1  ;;  %v1214_v27 = vsel %vm3963_vm4, %v3551_v62, %v1211_v14  ;;  %v3998_v33 = vsub.s32 %v980_v2, %v983_v6  ;;  %v470_v13 = vmul.f32 %v3488_v53, %v3972_v42 }
 0x1ec   : > { %2460 = vcosq.f32 %v1214_v27  ;;  %v4002_v51 = vand.u32 3, %v1215_v39  ;;  %v1569_v17 = vor.u32 %v1568_v19, %v1567_v18  ;;  %v1586_v46 = vshll.u32 %v1546_v50, 8 }
 0x1ed   : > { %2462 = vsinq.f32 %v1214_v27  ;;  %v986_v28 = vsub.s32 0, %v3998_v33  ;;  %vm1570_vm8 = vcmp.lt.s32.totalorder %v1551_v59, 1  ;;  %vm1573_vm9 = vcmp.lt.s32.totalorder %v1551_v59, 4 }
 0x1ee   : > { %v1554_v1 = vshrl.u32 %v2501_v41, %v1553_v11  ;;  %v1575_v9 = vsel %vm1573_vm9, %v1563_v7, 2102212464  ;;  %v1578_v63 = vsel %vm1570_vm8, %v1557_v10, %v1560_v47  ;;  %v1579_v30 = vsel %vm1573_vm9, %v1566_v23, 920167782 }
 0x1ef   : > { %v2284_v54 = vmin.u32 %v986_v28, %v3998_v33  ;;  %vm1571_vm11 = vcmp.lt.s32.totalorder %v1551_v59, 2  ;;  %vm1572_vm12 = vcmp.lt.s32.totalorder %v1551_v59, 3  ;;  %v4008_v2 = vadd.f32 %v3494_v44, %v470_v13 }
 0x1f0   : > { %v1574_v16 = vsel %vm1570_vm8, %v1554_v1, %v1557_v10  ;;  %v1580_v58 = vsel %vm1572_vm12, %v1563_v7, %v1579_v30  ;;  %v1582_v61 = vsel %vm1570_vm8, %v1560_v47, %v1563_v7  ;;  %v1583_v15 = vsel %vm1573_vm9, %v1569_v17, 1326507024 }
 0x1f1   : > { %v988_v39 = vclz %v2284_v54  ;;  %v1576_v32 = vsel %vm1572_vm12, %v1560_v47, %v1575_v9  ;;  %v1581_v50 = vsel %vm1571_vm11, %v1578_v63, %v1580_v58  ;;  %v1584_v45 = vsel %vm1572_vm12, %v1566_v23, %v1583_v15 }
 0x1f2   : > { %vm922_vm13 = vcmp.lt.s32.totalorder %v3739_v34, 0  ;;  %v1585_v11 = vsel %vm1571_vm11, %v1582_v61, %v1584_v45  ;;  %v4013_v26 = vmul.u32.u64.low %v1586_v46, %v1581_v50  ;;  %v4014_v5 = vmul.u32.u64.high %v1586_v46, %v1581_v50, %v4013_v26 }
 0x1f3   : > { %vm1218_vm14 = vweird.f32 %v3551_v62  ;;  %vm1220_vm3 = vcmp.lt.s32.totalorder %v4002_v51, 2  ;;  %v2285_v25 = vadd.s32 4294967294, %v988_v39  ;;  %vm1221_vm6 = vcmp.eq.s32.totalorder %v4002_v51, 0 }
 0x1f4   : > { %v4019_v24 = vmul.u32.u64.low %v1586_v46, %v1585_v11  ;;  %v4020_v40 = vmul.u32.u64.high %v1586_v46, %v1585_v11, %v4019_v24  ;;  %vm1224_vm1 = vcmp.eq.s32.totalorder %v4002_v51, 2  ;;  %v1577_v35 = vsel %vm1571_vm11, %v1574_v16, %v1576_v32 }
 0x1f5   : > { %v1335_v0 = vand.u32 2139095040, %v4008_v2  ;;  %v976_v3 = vadd.s32 %v3929_v36, %v3941_v37  ;;  %vm2286_vm2 = vcmp.lt.s32.totalorder %v2285_v25, 0  ;;  %v1006_v19 = vsub.s32 4, %v3980_v52 }
 0x1f6   : > { %v4030_v6 = vsel %vm441_vm15, %v440_v22, %v378_v29  ;;  %v2461_v10 = vpop.eup %2460  ;;  %v991_v18 = vsel %vm2286_vm2, 0, %v2285_v25  ;;  %v1596_v14 = vadd.s32 1, %v4014_v5  ;;  %v1332_v47 = vand.u32 2147483647, %v4008_v2 }
 0x1f7   : > { %v1336_v7 = vshrl.u32 %v1335_v0, 23  ;;  %v2463_v59 = vpop.eup %2462  ;;  %v1225_v23 = vxor.u32 2147483648, %v2461_v10  ;;  %v992_v27 = vsub.s32 32, %v991_v18  ;;  %v996_v13 = vsub.s32 4294967266, %v991_v18 }
 0x1f8   : > { %v1593_v17 = vmul.u32 %v1586_v46, %v1577_v35  ;;  %v1222_v28 = vxor.u32 2147483648, %v2463_v59  ;;  %v993_v36 = vshll.u32 %v3998_v33, %v991_v18  ;;  %vm1595_vm7 = vc.u32 %v4020_v40, %v4013_v26 }
 0x1f9   : > { %v2299_v37 = vadd.s32 4294967169, %v1336_v7  ;;  %v1226_v22 = vsel %vm1224_vm1, %v1225_v23, %v2463_v59  ;;  %v994_v1 = vshrl.u32 %v976_v3, %v992_v27  ;;  %v997_v9 = vadd.s32 127, %v996_v13 }
 0x1fa   : > { %v1597_v63 = vsel %vm1595_vm7, %v1596_v14, %v4014_v5  ;;  %v1223_v30 = vsel %vm1221_vm6, %v2461_v10, %v1222_v28  ;;  %v1339_v46 = vand.u32 8388607, %v1332_v47  ;;  %v1007_v15 = vsel %vm922_vm13, %v1006_v19, %v3980_v52 }
 0x1fb   : > { %v1598_v54 = vadd.s32 %v1597_v63, %v1593_v17  ;;  %v1342_v33 = vadd.s32 1, %v2299_v37  ;;  %v1227_v16 = vsel %vm1220_vm3, %v1223_v30, %v1226_v22  ;;  %v995_v58 = vor.u32 %v994_v1, %v993_v36 }
 0x1fc   : > { %v998_v61 = vshll.u32 %v997_v9, 23  ;;  %v1228_v39 = vsel %vm1218_vm14, nan, %v1227_v16  ;;  %v4373_v32 = vand.u32 2147483647, %v3739_v34  ;;  %v476_v52 = vmul.f32 %v3488_v53, %v4030_v6 }
 0x1fd   : > { %v1599_v45 = vadd.s32 536870912, %v1598_v54  ;;  %vm1343_vm8 = vcmp.gt.s32.totalorder %v1342_v33, 0  ;;  %v2173_v51 = vsel %vm3858_vm0, %v3507_v43, %v1228_v39  ;;  %v1340_v25 = vor.u32 8388608, %v1339_v46 }
 0x1fe   : > { %vm4053_vm4 = vcmp.le.f32.partialorder %v4373_v32, 0.7853982  ;;  %v999_v11 = vor.u32 4788187, %v998_v61  ;;  %v1344_v5 = vsel %vm1343_vm8, %v1342_v33, 0  ;;  %2189 = vst [vmem:[%s3007_s12 + $0x30] sm:$0xff] %v2173_v51  ;;  %v1002_v0 = vcvt.s32.f32 %v995_v58 }
 0x1ff   : > { %v1009_v62 = vsel %vm4053_vm4, 0, %v1007_v15  ;;  %v4065_v29 = vshrl.u32 %v1599_v45, 30  ;;  %v1346_v24 = vand.u32 31, %v1344_v5  ;;  %v430_v3 = vsel %vm423_vm5, %v3230_v38, %v3344_v20 }
 0x200   : > { %v1000_v35 = vand.u32 2147483647, %v999_v11  ;;  %v4073_v10 = vsel %vm432_vm10, %v430_v3, %v3453_v12  ;;  %v4075_v14 = vand.u32 3, %v1009_v62  ;;  %v4078_v7 = vadd.f32 %v3494_v44, %v476_v52 }
 0x201   : > { %v1601_v43 = vshll.u32 %v4065_v29, 30  ;;  %v1347_v19 = vsub.s32 32, %v1346_v24  ;;  %v4082_v23 = vshrl.u32 %v1344_v5, 5  ;;  %v4085_v38 = vshll.u32 %v1340_v25, 8 }
 0x202   : > { %v1003_v18 = vmul.f32 %v1002_v0, %v1000_v35  ;;  %v1349_v13 = vshll.u32 %v2501_v41, %v1346_v24  ;;  %v1352_v36 = vshll.u32 %v4357_v8, %v1346_v24  ;;  %v1355_v37 = vshll.u32 %v4358_v49, %v1346_v24 }
 0x203   : > { %v4080_v59 = vsub.s32 %v1598_v54, %v1601_v43  ;;  %v1350_v27 = vshrl.u32 %v4357_v8, %v1347_v19  ;;  %v1353_v12 = vshrl.u32 %v4358_v49, %v1347_v19  ;;  %v1356_v17 = vshrl.u32 %v2504_v55, %v1347_v19 }
 0x204   : > { %v1004_v20 = vxor.u32 2147483648, %v1003_v18  ;;  %v1359_v22 = vshrl.u32 %v2505_v57, %v1347_v19  ;;  %v1358_v63 = vshll.u32 %v2504_v55, %v1346_v24  ;;  %v1953_v30 = vand.u32 2139095040, %v4078_v7 }
 0x205   : > { %v1604_v28 = vsub.s32 0, %v4080_v59  ;;  %v1351_v9 = vor.u32 %v1350_v27, %v1349_v13  ;;  %v1354_v33 = vor.u32 %v1353_v12, %v1352_v36  ;;  %v1357_v16 = vor.u32 %v1356_v17, %v1355_v37 }
 0x206   : > { %v1005_v1 = vsel %vm922_vm13, %v1004_v20, %v1003_v18  ;;  %v1360_v58 = vor.u32 %v1359_v22, %v1358_v63  ;;  %v1361_v61 = vshll.u32 %v2505_v57, %v1346_v24  ;;  %v1362_v15 = vshrl.u32 %v2506_v4, %v1347_v19 }
 0x207   : > { %v1008_v54 = vsel %vm4053_vm4, %v3739_v34, %v1005_v1  ;;  %v2308_v46 = vmin.u32 %v1604_v28, %v4080_v59  ;;  %v1348_v32 = vshrl.u32 %v2501_v41, %v1347_v19  ;;  %vm1364_vm5 = vcmp.lt.s32.totalorder %v4082_v23, 1  ;;  %v376_v28 = vpop.permute.xlu0 %375 }
 0x208   : > { %2464 = vcosq.f32 %v1008_v54  ;;  %v1363_v45 = vor.u32 %v1362_v15, %v1361_v61  ;;  %vm1365_vm10 = vcmp.lt.s32.totalorder %v4082_v23, 2  ;;  %vm1366_vm9 = vcmp.lt.s32.totalorder %v4082_v23, 3 }
 0x209   : > { %2466 = vsinq.f32 %v1008_v54  ;;  %v1606_v39 = vclz %v2308_v46  ;;  %vm1367_vm11 = vcmp.lt.s32.totalorder %v4082_v23, 4  ;;  %v1372_v11 = vsel %vm1364_vm5, %v1351_v9, %v1354_v33 }
 0x20a   : > { %v1369_v51 = vsel %vm1367_vm11, %v1357_v16, 2102212464  ;;  %v1373_v5 = vsel %vm1367_vm11, %v1360_v58, 920167782  ;;  %vm1540_vm12 = vcmp.lt.s32.totalorder %v3848_v60, 0  ;;  %v1368_v52 = vsel %vm1364_vm5, %v1348_v32, %v1351_v9 }
 0x20b   : > { %v2309_v50 = vadd.s32 4294967294, %v1606_v39  ;;  %v1374_v62 = vsel %vm1366_vm9, %v1357_v16, %v1373_v5  ;;  %v1376_v25 = vsel %vm1364_vm5, %v1354_v33, %v1357_v16  ;;  %v1377_v24 = vsel %vm1367_vm11, %v1363_v45, 1326507024 }
 0x20c   : > { %vm1015_vm13 = vcmp.eq.s32.totalorder %v4075_v14, 0  ;;  %v1370_v35 = vsel %vm1366_vm9, %v1354_v33, %v1369_v51  ;;  %v1375_v0 = vsel %vm1365_vm10, %v1372_v11, %v1374_v62  ;;  %v1378_v3 = vsel %vm1366_vm9, %v1360_v58, %v1377_v24 }
 0x20d   : > { %vm2310_vm14 = vcmp.lt.s32.totalorder %v2309_v50, 0  ;;  %vm1014_vm3 = vcmp.lt.s32.totalorder %v4075_v14, 2  ;;  %v1379_v19 = vsel %vm1365_vm10, %v1376_v25, %v1378_v3  ;;  %vm1012_vm6 = vweird.f32 %v3739_v34 }
 0x20e   : > { %v1609_v43 = vsel %vm2310_vm14, 0, %v2309_v50  ;;  %v4117_v18 = vmul.u32.u64.low %v4085_v38, %v1375_v0  ;;  %v4118_v27 = vmul.u32.u64.high %v4085_v38, %v1375_v0, %v4117_v18  ;;  %v1594_v20 = vadd.s32 %v4013_v26, %v4020_v40 }
 0x20f   : > { %v1610_v13 = vsub.s32 32, %v1609_v43  ;;  %v1614_v12 = vsub.s32 4294967266, %v1609_v43  ;;  %v1950_v17 = vand.u32 2147483647, %v4078_v7  ;;  %v1624_v36 = vsub.s32 4, %v4065_v29 }
 0x210   : > { %v4127_v37 = vmul.u32.u64.low %v4085_v38, %v1379_v19  ;;  %v4128_v22 = vmul.u32.u64.high %v4085_v38, %v1379_v19, %v4127_v37  ;;  %v1954_v1 = vshrl.u32 %v1953_v30, 23  ;;  %v1611_v9 = vshll.u32 %v4080_v59, %v1609_v43 }
 0x211   : > { %v1612_v63 = vshrl.u32 %v1594_v20, %v1610_v13  ;;  %v1615_v54 = vadd.s32 127, %v1614_v12  ;;  %v1371_v46 = vsel %vm1365_vm10, %v1368_v52, %v1370_v35  ;;  %vm1018_vm1 = vcmp.eq.s32.totalorder %v4075_v14, 2 }
 0x212   : > { %v2465_v26 = vpop.eup %2464  ;;  %v1390_v40 = vadd.s32 1, %v4118_v27  ;;  %v2323_v33 = vadd.s32 4294967169, %v1954_v1  ;;  %v4137_v16 = vsel %vm441_vm15, %v4073_v10, %v376_v28  ;;  %v1957_v59 = vand.u32 8388607, %v1950_v17 }
 0x213   : > { %v2467_v58 = vpop.eup %2466  ;;  %v1019_v61 = vxor.u32 2147483648, %v2465_v26  ;;  %v1613_v30 = vor.u32 %v1612_v63, %v1611_v9  ;;  %v1616_v15 = vshll.u32 %v1615_v54, 23  ;;  %v1387_v23 = vmul.u32 %v4085_v38, %v1371_v46 }
 0x214   : > { %v1016_v39 = vxor.u32 2147483648, %v2467_v58  ;;  %vm1389_vm2 = vc.u32 %v4128_v22, %v4117_v18  ;;  %v1960_v32 = vadd.s32 1, %v2323_v33  ;;  %v1625_v10 = vsel %vm1540_vm12, %v1624_v36, %v4065_v29 }
 0x215   : > { %v1020_v45 = vsel %vm1018_vm1, %v1019_v61, %v2467_v58  ;;  %v1617_v50 = vor.u32 4788187, %v1616_v15  ;;  %v1391_v51 = vsel %vm1389_vm2, %v1390_v40, %v4118_v27  ;;  %v474_v38 = vmul.f32 %v3488_v53, %v4137_v16 }
 0x216   : > { %v1017_v11 = vsel %vm1015_vm13, %v2465_v26, %v1016_v39  ;;  %v1392_v5 = vadd.s32 %v1391_v51, %v1387_v23  ;;  %vm1961_vm15 = vcmp.gt.s32.totalorder %v1960_v32, 0  ;;  %v1620_v25 = vcvt.s32.f32 %v1613_v30 }
 0x217   : > { %v1021_v52 = vsel %vm1014_vm3, %v1017_v11, %v1020_v45  ;;  %v1618_v62 = vand.u32 2147483647, %v1617_v50  ;;  %v1962_v24 = vsel %vm1961_vm15, %v1960_v32, 0  ;;  %vm4161_vm7 = vcmp.le.f32.partialorder %v1538_v31, 0.7853982 }
 0x218   : > { %v1022_v29 = vsel %vm1012_vm6, nan, %v1021_v52  ;;  %v1393_v35 = vadd.s32 536870912, %v1392_v5  ;;  %v1964_v0 = vand.u32 31, %v1962_v24  ;;  %v1627_v14 = vsel %vm4161_vm7, 0, %v1625_v10 }
 0x219   : > { %v2171_v3 = vsel %vm3858_vm0, %v3585_v56, %v1022_v29  ;;  %v1621_v53 = vmul.f32 %v1620_v25, %v1618_v62  ;;  %v1958_v20 = vor.u32 8388608, %v1957_v59  ;;  %v4170_v13 = vshrl.u32 %v1962_v24, 5 }
 0x21a   : > { %2187 = vst [vmem:[%s3007_s12 + $0x20] sm:$0xff] %v2171_v3  ;;  %v4168_v19 = vshrl.u32 %v1393_v35, 30  ;;  %v1965_v34 = vsub.s32 32, %v1964_v0  ;;  %v4173_v56 = vadd.f32 %v3494_v44, %v474_v38  ;;  %v1967_v12 = vshll.u32 %v2501_v41, %v1964_v0 }
 0x21b   : > { %v1622_v27 = vxor.u32 2147483648, %v1621_v53  ;;  %v1970_v36 = vshll.u32 %v4357_v8, %v1964_v0  ;;  %v1973_v46 = vshll.u32 %v4358_v49, %v1964_v0  ;;  %v1976_v26 = vshll.u32 %v2504_v55, %v1964_v0 }
 0x21c   : > { %v1395_v31 = vshll.u32 %v4168_v19, 30  ;;  %v1968_v28 = vshrl.u32 %v4357_v8, %v1965_v34  ;;  %v1971_v1 = vshrl.u32 %v4358_v49, %v1965_v34  ;;  %v1974_v9 = vshrl.u32 %v2504_v55, %v1965_v34 }
 0x21d   : > { %v1623_v37 = vsel %vm1540_vm12, %v1622_v27, %v1621_v53  ;;  %v1977_v63 = vshrl.u32 %v2505_v57, %v1965_v34  ;;  %v1631_v15 = vand.u32 3, %v1627_v14  ;;  %v1979_v59 = vshll.u32 %v2505_v57, %v1964_v0 }
 0x21e   : > { %v1626_v44 = vsel %vm4161_vm7, %v3848_v60, %v1623_v37  ;;  %v4187_v54 = vsub.s32 %v1392_v5, %v1395_v31  ;;  %v1969_v40 = vor.u32 %v1968_v28, %v1967_v12  ;;  %v1972_v33 = vor.u32 %v1971_v1, %v1970_v36 }
 0x21f   : > { %2468 = vcosq.f32 %v1626_v44  ;;  %v1975_v61 = vor.u32 %v1974_v9, %v1973_v46  ;;  %v1978_v30 = vor.u32 %v1977_v63, %v1976_v26  ;;  %v1980_v39 = vshrl.u32 %v2506_v4, %v1965_v34 }
 0x220   : > { %2470 = vsinq.f32 %v1626_v44  ;;  %v1398_v58 = vsub.s32 0, %v4187_v54  ;;  %v1747_v23 = vand.u32 2139095040, %v4173_v56  ;;  %v1966_v45 = vshrl.u32 %v2501_v41, %v1965_v34 }
 0x221   : > { %vm1982_vm4 = vcmp.lt.s32.totalorder %v4170_v13, 1  ;;  %v1998_v50 = vshll.u32 %v1958_v20, 8  ;;  %v1981_v10 = vor.u32 %v1980_v39, %v1979_v59  ;;  %vm1984_vm8 = vcmp.lt.s32.totalorder %v4170_v13, 3 }
 0x222   : > { %v2300_v32 = vmin.u32 %v1398_v58, %v4187_v54  ;;  %vm1985_vm5 = vcmp.lt.s32.totalorder %v4170_v13, 4  ;;  %v1990_v51 = vsel %vm1982_vm4, %v1969_v40, %v1972_v33  ;;  %v1994_v52 = vsel %vm1982_vm4, %v1972_v33, %v1975_v61 }
 0x223   : > { %v1987_v5 = vsel %vm1985_vm5, %v1975_v61, 2102212464  ;;  %v1991_v38 = vsel %vm1985_vm5, %v1978_v30, 920167782  ;;  %vm1632_vm10 = vcmp.lt.s32.totalorder %v1631_v15, 2  ;;  %vm1983_vm9 = vcmp.lt.s32.totalorder %v4170_v13, 2 }
 0x224   : > { %v1400_v11 = vclz %v2300_v32  ;;  %v1992_v62 = vsel %vm1984_vm8, %v1975_v61, %v1991_v38  ;;  %v1995_v25 = vsel %vm1985_vm5, %v1981_v10, 1326507024  ;;  %v1748_v24 = vshrl.u32 %v1747_v23, 23 }
 0x225   : > { %vm1630_vm11 = vweird.f32 %v3848_v60  ;;  %v1986_v35 = vsel %vm1982_vm4, %v1966_v45, %v1969_v40  ;;  %v1993_v0 = vsel %vm1983_vm9, %v1990_v51, %v1992_v62  ;;  %v1996_v3 = vsel %vm1984_vm8, %v1978_v30, %v1995_v25 }
 0x226   : > { %v2301_v29 = vadd.s32 4294967294, %v1400_v11  ;;  %v1988_v43 = vsel %vm1984_vm8, %v1972_v33, %v1987_v5  ;;  %v1997_v53 = vsel %vm1983_vm9, %v1994_v52, %v1996_v3  ;;  %v2315_v31 = vadd.s32 4294967169, %v1748_v24 }
 0x227   : > { %v4218_v14 = vmul.u32.u64.low %v1998_v50, %v1993_v0  ;;  %v4219_v34 = vmul.u32.u64.high %v1998_v50, %v1993_v0, %v4218_v14  ;;  %v4222_v27 = vmul.u32.u64.low %v1998_v50, %v1997_v53  ;;  %v4223_v20 = vmul.u32.u64.high %v1998_v50, %v1997_v53, %v4222_v27 }
 0x228   : > { %vm2302_vm12 = vcmp.lt.s32.totalorder %v2301_v29, 0  ;;  %vm1633_vm13 = vcmp.eq.s32.totalorder %v1631_v15, 0  ;;  %vm1636_vm14 = vcmp.eq.s32.totalorder %v1631_v15, 2  ;;  %v1388_v28 = vadd.s32 %v4117_v18, %v4128_v22 }
 0x229   : > { %v2469_v12 = vpop.eup %2468  ;;  %v1403_v36 = vsel %vm2302_vm12, 0, %v2301_v29  ;;  %v1989_v44 = vsel %vm1983_vm9, %v1986_v35, %v1988_v43  ;;  %v2008_v26 = vadd.s32 1, %v4219_v34  ;;  %v1744_v40 = vand.u32 2147483647, %v4173_v56 }
 0x22a   : > { %v2471_v37 = vpop.eup %2470  ;;  %v1637_v1 = vxor.u32 2147483648, %v2469_v12  ;;  %v1404_v9 = vsub.s32 32, %v1403_v36  ;;  %v1408_v63 = vsub.s32 4294967266, %v1403_v36  ;;  %v1754_v33 = vadd.s32 1, %v2315_v31 }
 0x22b   : > { %v1634_v46 = vxor.u32 2147483648, %v2471_v37  ;;  %v1405_v61 = vshll.u32 %v4187_v54, %v1403_v36  ;;  %v2005_v22 = vmul.u32 %v1998_v50, %v1989_v44  ;;  %vm2007_vm3 = vc.u32 %v4223_v20, %v4218_v14 }
 0x22c   : > { %v1638_v58 = vsel %vm1636_vm14, %v1637_v1, %v2471_v37  ;;  %v1406_v30 = vshrl.u32 %v1388_v28, %v1404_v9  ;;  %v1409_v59 = vadd.s32 127, %v1408_v63  ;;  %vm1755_vm6 = vcmp.gt.s32.totalorder %v1754_v33, 0 }
 0x22d   : > { %v1635_v18 = vsel %vm1633_vm13, %v2469_v12, %v1634_v46  ;;  %v2009_v32 = vsel %vm2007_vm3, %v2008_v26, %v4219_v34  ;;  %v1756_v10 = vsel %vm1755_vm6, %v1754_v33, 0  ;;  %v1418_v11 = vsub.s32 4, %v4168_v19 }
 0x22e   : > { %v1639_v13 = vsel %vm1632_vm10, %v1635_v18, %v1638_v58  ;;  %v1407_v39 = vor.u32 %v1406_v30, %v1405_v61  ;;  %v1410_v23 = vshll.u32 %v1409_v59, 23  ;;  %v2010_v54 = vadd.s32 %v2009_v32, %v2005_v22 }
 0x22f   : > { %v1640_v45 = vsel %vm1630_vm11, nan, %v1639_v13  ;;  %v1751_v15 = vand.u32 8388607, %v1744_v40  ;;  %v1758_v38 = vand.u32 31, %v1756_v10  ;;  %vm4248_vm1 = vcmp.le.f32.partialorder %v1332_v47, 0.7853982 }
 0x230   : > { %v2177_v51 = vsel %vm3858_vm0, %v3725_v21, %v1640_v45  ;;  %v1411_v50 = vor.u32 4788187, %v1410_v23  ;;  %v2011_v5 = vadd.s32 536870912, %v2010_v54  ;;  %v1414_v62 = vcvt.s32.f32 %v1407_v39 }
 0x231   : > { %2193 = vst [vmem:[%s3007_s12 + $0x50] sm:$0xff] %v2177_v51  ;;  %vm1334_vm2 = vcmp.lt.s32.totalorder %v4008_v2, 0  ;;  %v1759_v25 = vsub.s32 32, %v1758_v38  ;;  %v1752_v35 = vor.u32 8388608, %v1751_v15  ;;  %v1757_v0 = vshrl.u32 %v1756_v10, 5 }
 0x232   : > { %v1412_v52 = vand.u32 2147483647, %v1411_v50  ;;  %v4253_v21 = vshrl.u32 %v2011_v5, 30  ;;  %v1419_v29 = vsel %vm1334_vm2, %v1418_v11, %v4168_v19  ;;  %v1761_v43 = vshll.u32 %v2501_v41, %v1758_v38 }
 0x233   : > { %v1762_v47 = vshrl.u32 %v4357_v8, %v1759_v25  ;;  %v1764_v53 = vshll.u32 %v4357_v8, %v1758_v38  ;;  %v1765_v27 = vshrl.u32 %v4358_v49, %v1759_v25  ;;  %v1768_v31 = vshrl.u32 %v2504_v55, %v1759_v25 }
 0x234   : > { %v1415_v24 = vmul.f32 %v1414_v62, %v1412_v52  ;;  %v2013_v3 = vshll.u32 %v4253_v21, 30  ;;  %v1771_v12 = vshrl.u32 %v2505_v57, %v1759_v25  ;;  %v1767_v19 = vshll.u32 %v4358_v49, %v1758_v38 }
 0x235   : > { %v1770_v36 = vshll.u32 %v2504_v55, %v1758_v38  ;;  %v1774_v37 = vshrl.u32 %v2506_v4, %v1759_v25  ;;  %v1763_v9 = vor.u32 %v1762_v47, %v1761_v43  ;;  %v1766_v63 = vor.u32 %v1765_v27, %v1764_v53 }
 0x236   : > { %v1416_v34 = vxor.u32 2147483648, %v1415_v24  ;;  %v2014_v28 = vsub.s32 %v2010_v54, %v2013_v3  ;;  %v1773_v8 = vshll.u32 %v2505_v57, %v1758_v38  ;;  %v1769_v26 = vor.u32 %v1768_v31, %v1767_v19 }
 0x237   : > { %v1772_v33 = vor.u32 %v1771_v12, %v1770_v36  ;;  %v1421_v49 = vsel %vm4248_vm1, 0, %v1419_v29  ;;  %v1792_v4 = vshll.u32 %v1752_v35, 8  ;;  %vm1776_vm15 = vcmp.lt.s32.totalorder %v1757_v0, 1 }
 0x238   : > { %v1417_v1 = vsel %vm1334_vm2, %v1416_v34, %v1415_v24  ;;  %v2016_v46 = vsub.s32 0, %v2014_v28  ;;  %v1775_v55 = vor.u32 %v1774_v37, %v1773_v8  ;;  %vm1779_vm7 = vcmp.lt.s32.totalorder %v1757_v0, 4 }
 0x239   : > { %v1420_v44 = vsel %vm4248_vm1, %v4008_v2, %v1417_v1  ;;  %vm1777_vm4 = vcmp.lt.s32.totalorder %v1757_v0, 2  ;;  %vm1778_vm8 = vcmp.lt.s32.totalorder %v1757_v0, 3  ;;  %v1784_v57 = vsel %vm1776_vm15, %v1763_v9, %v1766_v63 }
 0x23a   : > { %2472 = vcosq.f32 %v1420_v44  ;;  %v2324_v58 = vmin.u32 %v2016_v46, %v2014_v28  ;;  %v1785_v61 = vsel %vm1779_vm7, %v1772_v33, 920167782  ;;  %v1781_v59 = vsel %vm1779_vm7, %v1769_v26, 2102212464 }
 0x23b   : > { %2474 = vsinq.f32 %v1420_v44  ;;  %v1786_v18 = vsel %vm1778_vm8, %v1769_v26, %v1785_v61  ;;  %v1788_v22 = vsel %vm1776_vm15, %v1766_v63, %v1769_v26  ;;  %v1760_v13 = vshrl.u32 %v2501_v41, %v1759_v25 }
 0x23c   : > { %v2018_v30 = vclz %v2324_v58  ;;  %v1787_v39 = vsel %vm1777_vm4, %v1784_v57, %v1786_v18  ;;  %v1789_v23 = vsel %vm1779_vm7, %v1775_v55, 1326507024  ;;  %v1425_v51 = vand.u32 3, %v1421_v49 }
 0x23d   : > { %v1790_v45 = vsel %vm1778_vm8, %v1772_v33, %v1789_v23  ;;  %v4280_v54 = vmul.u32.u64.low %v1792_v4, %v1787_v39  ;;  %v4281_v10 = vmul.u32.u64.high %v1792_v4, %v1787_v39, %v4280_v54  ;;  %v1780_v50 = vsel %vm1776_vm15, %v1760_v13, %v1763_v9 }
 0x23e   : > { %v2325_v32 = vadd.s32 4294967294, %v2018_v30  ;;  %v1782_v11 = vsel %vm1778_vm8, %v1766_v63, %v1781_v59  ;;  %v1791_v15 = vsel %vm1777_vm4, %v1788_v22, %v1790_v45  ;;  %v2006_v41 = vadd.s32 %v4218_v14, %v4223_v20 }
 0x23f   : > { %v4286_v5 = vmul.u32.u64.low %v1792_v4, %v1791_v15  ;;  %v4287_v38 = vmul.u32.u64.high %v1792_v4, %v1791_v15, %v4286_v5  ;;  %v1783_v25 = vsel %vm1777_vm4, %v1780_v50, %v1782_v11  ;;  %v1802_v24 = vadd.s32 1, %v4281_v10 }
 0x240   : > { %vm2326_vm5 = vcmp.lt.s32.totalorder %v2325_v32, 0  ;;  %vm1427_vm10 = vcmp.eq.s32.totalorder %v1425_v51, 0  ;;  %vm1430_vm9 = vcmp.eq.s32.totalorder %v1425_v51, 2  ;;  %v1799_v27 = vmul.u32 %v1792_v4, %v1783_v25 }
 0x241   : > { %v2021_v52 = vsel %vm2326_vm5, 0, %v2325_v32  ;;  %vm1801_vm11 = vc.u32 %v4287_v38, %v4280_v54  ;;  %vm1426_vm12 = vcmp.lt.s32.totalorder %v1425_v51, 2  ;;  %vm1424_vm13 = vweird.f32 %v4008_v2 }
 0x242   : > { %v2022_v62 = vsub.s32 32, %v2021_v52  ;;  %v2026_v60 = vsub.s32 4294967266, %v2021_v52  ;;  %v2023_v43 = vshll.u32 %v2014_v28, %v2021_v52  ;;  %v1803_v31 = vsel %vm1801_vm11, %v1802_v24, %v4281_v10 }
 0x243   : > { %v1804_v19 = vadd.s32 %v1803_v31, %v1799_v27  ;;  %vm1952_vm14 = vcmp.lt.s32.totalorder %v4078_v7, 0  ;;  %vm1951_vm3 = vcmp.le.f32.partialorder %v1950_v17, 0.7853982  ;;  %v2036_v55 = vsub.s32 4, %v4253_v21 }
 0x244   : > { %v2473_v29 = vpop.eup %2472  ;;  %v2024_v47 = vshrl.u32 %v2006_v41, %v2022_v62  ;;  %v2027_v53 = vadd.s32 127, %v2026_v60  ;;  %v1800_v17 = vadd.s32 %v4280_v54, %v4287_v38  ;;  %vm2042_vm7 = vweird.f32 %v4078_v7 }
 0x245   : > { %v2475_v35 = vpop.eup %2474  ;;  %v1431_v3 = vxor.u32 2147483648, %v2473_v29  ;;  %v1805_v1 = vadd.s32 536870912, %v1804_v19  ;;  %v2037_v57 = vsel %vm1952_vm14, %v2036_v55, %v4253_v21  ;;  %vm1746_vm4 = vcmp.lt.s32.totalorder %v4173_v56, 0 }
 0x246   : > { %v1428_v34 = vxor.u32 2147483648, %v2475_v35  ;;  %v2025_v20 = vor.u32 %v2024_v47, %v2023_v43  ;;  %v2028_v0 = vshll.u32 %v2027_v53, 23  ;;  %v2039_v30 = vsel %vm1951_vm3, 0, %v2037_v57 }
 0x247   : > { %v1432_v14 = vsel %vm1430_vm9, %v1431_v3, %v2475_v35  ;;  %v1806_v44 = vshrl.u32 %v1805_v1, 30  ;;  %v2043_v18 = vand.u32 3, %v2039_v30  ;;  %vm1745_vm8 = vcmp.le.f32.partialorder %v1744_v40, 0.7853982 }
 0x248   : > { %v1429_v12 = vsel %vm1427_vm10, %v2473_v29, %v1428_v34  ;;  %v2029_v36 = vor.u32 4788187, %v2028_v0  ;;  %v2032_v8 = vcvt.s32.f32 %v2025_v20  ;;  %vm1836_vm11 = vweird.f32 %v4173_v56 }
 0x249   : > { %v1433_v28 = vsel %vm1426_vm12, %v1429_v12, %v1432_v14  ;;  %v1807_v26 = vshll.u32 %v1806_v44, 30  ;;  %vm2048_vm1 = vcmp.eq.s32.totalorder %v2043_v18, 2  ;;  %vm2045_vm2 = vcmp.eq.s32.totalorder %v2043_v18, 0 }
 0x24a   : > { %v1434_v37 = vsel %vm1424_vm13, nan, %v1433_v28  ;;  %v2030_v63 = vand.u32 2147483647, %v2029_v36  ;;  %vm2044_vm15 = vcmp.lt.s32.totalorder %v2043_v18, 2  ;;  %v1830_v3 = vsub.s32 4, %v1806_v44 }
 0x24b   : > { %v2175_v9 = vsel %vm3858_vm0, %v3972_v42, %v1434_v37  ;;  %v1808_v49 = vsub.s32 %v1804_v19, %v1807_v26 }
 0x24c   : > { %2191 = vst [vmem:[%s3007_s12 + $0x40] sm:$0xff] %v2175_v9  ;;  %v2033_v46 = vmul.f32 %v2032_v8, %v2030_v63  ;;  %v1831_v43 = vsel %vm1746_vm4, %v1830_v3, %v1806_v44 }
 0x24d   : > { %v1810_v58 = vsub.s32 0, %v1808_v49  ;;  %v1833_v47 = vsel %vm1745_vm8, 0, %v1831_v43 }
 0x24e   : > { %v2034_v33 = vxor.u32 2147483648, %v2033_v46 }
 0x24f   : > { %v2316_v42 = vmin.u32 %v1810_v58, %v1808_v49 }
 0x250   : > { %v2035_v2 = vsel %vm1952_vm14, %v2034_v33, %v2033_v46 }
 0x251   : > { %v2038_v4 = vsel %vm1951_vm3, %v4078_v7, %v2035_v2  ;;  %v1812_v61 = vclz %v2316_v42 }
 0x252   : > { %2476 = vcosq.f32 %v2038_v4 }
 0x253   : > { %2478 = vsinq.f32 %v2038_v4  ;;  %v2317_v59 = vadd.s32 4294967294, %v1812_v61 }
 0x255   : > { %vm2318_vm6 = vcmp.lt.s32.totalorder %v2317_v59, 0 }
 0x256   : > { %v1815_v22 = vsel %vm2318_vm6, 0, %v2317_v59 }
 0x257   : > { %v1816_v13 = vsub.s32 32, %v1815_v22  ;;  %v1820_v39 = vsub.s32 4294967266, %v1815_v22  ;;  %v1817_v10 = vshll.u32 %v1808_v49, %v1815_v22 }
 0x259   : > { %v1818_v51 = vshrl.u32 %v1800_v17, %v1816_v13  ;;  %v1821_v50 = vadd.s32 127, %v1820_v39 }
 0x25b   : > { %v1819_v15 = vor.u32 %v1818_v51, %v1817_v10  ;;  %v1822_v5 = vshll.u32 %v1821_v50, 23 }
 0x25c   : > { %v2477_v23 = vpop.eup %2476 }
 0x25d   : > { %v2479_v32 = vpop.eup %2478  ;;  %v2049_v45 = vxor.u32 2147483648, %v2477_v23  ;;  %v1823_v38 = vor.u32 4788187, %v1822_v5  ;;  %v1826_v25 = vcvt.s32.f32 %v1819_v15 }
 0x25e   : > { %v2046_v11 = vxor.u32 2147483648, %v2479_v32 }
 0x25f   : > { %v2050_v21 = vsel %vm2048_vm1, %v2049_v45, %v2479_v32  ;;  %v1824_v60 = vand.u32 2147483647, %v1823_v38 }
 0x260   : > { %v2047_v41 = vsel %vm2045_vm2, %v2477_v23, %v2046_v11 }
 0x261   : > { %v2051_v54 = vsel %vm2044_vm15, %v2047_v41, %v2050_v21  ;;  %v1827_v24 = vmul.f32 %v1826_v25, %v1824_v60 }
 0x262   : > { %v2052_v52 = vsel %vm2042_vm7, nan, %v2051_v54 }
 0x263   : > { %v2181_v62 = vsel %vm3858_vm0, %v4030_v6, %v2052_v52  ;;  %v1828_v29 = vxor.u32 2147483648, %v1827_v24  ;;  %v1837_v6 = vand.u32 3, %v1833_v47 }
 0x264   : > { %2197 = vst [vmem:[%s3007_s12 + $0x70] sm:$0xff] %v2181_v62 }
 0x265   : > { %v1829_v35 = vsel %vm1746_vm4, %v1828_v29, %v1827_v24  ;;  %vm1842_vm5 = vcmp.eq.s32.totalorder %v1837_v6, 2  ;;  %vm1839_vm10 = vcmp.eq.s32.totalorder %v1837_v6, 0  ;;  %vm1838_vm9 = vcmp.lt.s32.totalorder %v1837_v6, 2 }
 0x266   : > { %v1832_v7 = vsel %vm1745_vm8, %v4173_v56, %v1829_v35 }
 0x267   : > { %2480 = vcosq.f32 %v1832_v7 }
 0x268   : > { %2482 = vsinq.f32 %v1832_v7 }
 0x271   : > { %v2481_v53 = vpop.eup %2480 }
 0x272   : > { %v2483_v34 = vpop.eup %2482  ;;  %v1843_v27 = vxor.u32 2147483648, %v2481_v53 }
 0x273   : > { %v1840_v14 = vxor.u32 2147483648, %v2483_v34 }
 0x274   : > { %v1844_v20 = vsel %vm1842_vm5, %v1843_v27, %v2483_v34 }
 0x275   : > { %v1841_v0 = vsel %vm1839_vm10, %v2481_v53, %v1840_v14 }
 0x276   : > { %v1845_v40 = vsel %vm1838_vm9, %v1841_v0, %v1844_v20 }
 0x277   : > { %v1846_v31 = vsel %vm1836_vm11, nan, %v1845_v40 }
 0x278   : > { %v2179_v12 = vsel %vm3858_vm0, %v4137_v16, %v1846_v31 }
 0x279   : > { %2195 = vst [vmem:[%s3007_s12 + $0x60] sm:$0xff] %v2179_v12 }
 0x27a PF: > { %s14_s15 = sadd.s32 1, %s2492_s15  }
 0x27b   : > { %p11_p4 = scmp.ge.s32.totalorder %s14_s15, 4  }
 0x27d   :  { %13 = sbr.rel (!%p11_p4) target bundleno = 1 (0x1), region = 66 }

</bundles_post_ra>
